<compile_context>
chip_gen: v7x
topology: tpu7x:2x2x1
jax: 0.10.0
libtpu: 0.0.40
codegen_flags: <defaults>
</compile_context>

<pallas_src>
import functools

import numpy as np
import jax
import jax.numpy as jnp
from jax import lax
from jax.experimental import pallas as pl
from jax.experimental.pallas import tpu as pltpu

PATCH = 10  # encoder / decoder kernel+stride size


# ----------------------------------------------------------------------------
# In-kernel helpers
# ----------------------------------------------------------------------------
def _shift_rows(x, off):
    """y[r] = x[r + off] (zero fill past either end); off is a static int."""
    if off == 0:
        return x
    pad = jnp.zeros((abs(off), x.shape[1]), x.dtype)
    if off > 0:
        return jnp.concatenate([x[off:], pad], axis=0)
    return jnp.concatenate([pad, x[:off]], axis=0)


# ----------------------------------------------------------------------------
# Fused Pallas kernel: encode -> `steps` CGRU iterations -> decode
# ----------------------------------------------------------------------------
def _engine_kernel(xin_ref, w_in_ref, b_in_ref, mask_ref,
                   w_g_ref, b_g_ref, w_c_ref, b_c_ref,
                   w_d1_ref, b_d1_ref, w_d2_ref, b_d2_ref,
                   obs_ref, sat_ref,
                   st, sat_acc,
                   *, C, gw, steps, sat_limit, inv_norm):
    # ---- fused observation + action encoder: one (rows, 300+A) @ (300+A, C)
    st[...] = jnp.dot(xin_ref[...].astype(jnp.bfloat16), w_in_ref[...],
                      preferred_element_type=jnp.float32) + b_in_ref[...]
    sat_acc[...] = jnp.zeros_like(sat_acc)

    offsets = [dy * gw + dx for dy in (-1, 0, 1) for dx in (-1, 0, 1)]

    def neighbor_cat(x):
        # 3x3 zero-padded neighbourhood: lane-axis concat of static sublane
        # shifts (deduped by flattened row offset) * precomputed validity mask.
        cache = {}
        parts = []
        for off in offsets:
            if off not in cache:
                cache[off] = _shift_rows(x, off)
            parts.append(cache[off])
        return jnp.concatenate(parts, axis=1) * mask_ref[...]   # (rows, 9C)

    def body(_, carry):
        state = st[...]                                          # (rows, C)
        # fused update/reset gates: ONE (rows, 9C) @ (9C, 2C) MXU pass
        nbr = neighbor_cat(state).astype(jnp.bfloat16)
        gates_pre = jnp.dot(nbr, w_g_ref[...],
                            preferred_element_type=jnp.float32) + b_g_ref[...]
        u_pre = gates_pre[:, :C]
        r_pre = gates_pre[:, C:]
        u = jnp.clip(1.2 * jax.nn.sigmoid(u_pre) - 0.1, 0.0, 1.0)
        r = jnp.clip(1.2 * jax.nn.sigmoid(r_pre) - 0.1, 0.0, 1.0)
        # candidate: (rows, 9C) @ (9C, C)
        nbr_c = neighbor_cat(r * state).astype(jnp.bfloat16)
        c_pre = jnp.dot(nbr_c, w_c_ref[...],
                        preferred_element_type=jnp.float32) + b_c_ref[...]
        cand = jnp.tanh(c_pre)
        # saturation penalty: elementwise accumulate, reduce once at the end
        sat_acc[...] = sat_acc[...] + (
            jnp.maximum(jnp.abs(u_pre) - sat_limit, 0.0)
            + jnp.maximum(jnp.abs(r_pre) - sat_limit, 0.0)
            + jnp.maximum(jnp.abs(c_pre) - sat_limit, 0.0))
        st[...] = u * state + (1.0 - u) * cand
        return carry

    lax.fori_loop(0, steps, body, 0)

    # ---- single cross-lane sat reduction (centre-tap mask == row validity)
    valid = mask_ref[:, 4 * C:5 * C]
    sat_ref[...] = (jnp.zeros((1, 1), jnp.float32)
                    + jnp.sum(sat_acc[...] * valid) * inv_norm)

    # ---- observation decoder (runs once)
    h = jnp.dot(st[...].astype(jnp.bfloat16), w_d1_ref[...],
                preferred_element_type=jnp.float32) + b_d1_ref[...]
    h = jnp.maximum(h, 0.0)
    o = jnp.dot(h.astype(jnp.bfloat16), w_d2_ref[...],
                preferred_element_type=jnp.float32) + b_d2_ref[...]
    obs_ref[...] = jax.nn.sigmoid(o)


# ----------------------------------------------------------------------------
# Host-side helpers (plain numpy / JAX glue)
# ----------------------------------------------------------------------------
def _make_tap_mask(n, gh, gw, c, rows):
    """(rows, 9C) mask: columns [k*C,(k+1)*C) are 1 iff tap k of row p is valid."""
    m = np.zeros((rows, 9 * c), np.float32)
    for b in range(n):
        for i in range(gh):
            for j in range(gw):
                row = (b * gh + i) * gw + j
                for dy in (-1, 0, 1):
                    for dx in (-1, 0, 1):
                        if 0 <= i + dy < gh and 0 <= j + dx < gw:
                            k = (dy + 1) * 3 + (dx + 1)
                            m[row, k * c:(k + 1) * c] = 1.0
    return jnp.asarray(m)


def _init_conv(key, out_c, in_c, kh, kw, bias_c=None):
    fan_in = in_c * kh * kw
    k1, k2 = jax.random.split(key)
    w = jax.random.normal(k1, (out_c, in_c, kh, kw), jnp.float32) / np.sqrt(fan_in)
    bc = out_c if bias_c is None else bias_c
    b = jax.random.normal(k2, (bc,), jnp.float32) * 0.01
    return w, b


class NeuralGameEnginePallas:
    """Pallas TPU implementation of NeuralGameEngine.forward (eval mode)."""

    def __init__(self, state_channels, reward_state_channels, num_actions,
                 saturation_limit=0.9, key=None):
        if key is None:
            key = jax.random.PRNGKey(0)
        c, a = state_channels, num_actions
        c2 = state_channels // 2
        self.C, self.A, self.C2 = c, a, c2
        self.sat_limit = float(saturation_limit)
        pp = PATCH * PATCH

        keys = jax.random.split(key, 8)
        # torch-layout parameters (deterministic synthetic init)
        self.enc_w, self.enc_b = _init_conv(keys[0], c, 3, PATCH, PATCH)
        self.act_w, self.act_b = _init_conv(keys[1], c, a, 1, 1)
        self.wu_t, self.bu_t = _init_conv(keys[2], c, c, 3, 3)
        self.wr_t, self.br_t = _init_conv(keys[3], c, c, 3, 3)
        self.wc_t, self.bc_t = _init_conv(keys[4], c, c, 3, 3)
        # ConvTranspose2d(C, C2, 10, 10): weight (in=C, out=C2, kH, kW), bias (C2,)
        self.dec1_w, self.dec1_b = _init_conv(keys[5], c, c2, PATCH, PATCH, bias_c=c2)
        # 1x1 decoder conv: weight stored (3, C2, 1, 1), bias (3,)
        self.dec2_w, self.dec2_b = _init_conv(keys[6], 3, c2, 1, 1)
        # TODO(synk): PoolingRewardDecoder is not defined in the reference
        # source, so reward_predictions are not produced.

        # ---- kernel-layout parameters (weights in bf16 for single-pass MXU)
        # fused observation + action encoder: (300 + A, C)
        self.w_in = jnp.concatenate(
            [self.enc_w.reshape(c, 3 * pp).T, self.act_w[:, :, 0, 0].T],
            axis=0).astype(jnp.bfloat16)
        self.b_in = (self.enc_b + self.act_b).reshape(1, c)

        def conv3_mat(wt):  # (C_out, C_in, 3, 3) -> (9*C_in, C_out), tap-major
            return jnp.transpose(wt, (2, 3, 1, 0)).reshape(9 * c, c)

        # fused update/reset gate weight (9C, 2C) and candidate weight (9C, C)
        self.w_gate = jnp.concatenate(
            [conv3_mat(self.wu_t), conv3_mat(self.wr_t)], axis=1
        ).astype(jnp.bfloat16)
        self.b_gate = jnp.concatenate([self.bu_t, self.br_t]).reshape(1, 2 * c)
        self.w_cand = conv3_mat(self.wc_t).astype(jnp.bfloat16)
        self.b_cand = self.bc_t.reshape(1, c)

        # decoder: ConvTranspose2d(C,C2,10,10) as (C, 100*C2); 1x1 conv as a
        # block-diagonal (100*C2, 100*3) weight (kept block-diag to avoid an
        # in-kernel (rows,100*C2)->(rows*100,C2) relayout; it runs once).
        self.w1 = jnp.transpose(self.dec1_w, (0, 2, 3, 1)).reshape(
            c, pp * c2).astype(jnp.bfloat16)
        self.b1 = jnp.tile(self.dec1_b, pp).reshape(1, pp * c2)
        w2_small = self.dec2_w[:, :, 0, 0].T                      # (C2, 3)
        self.w2 = jnp.kron(jnp.eye(pp, dtype=jnp.float32),
                           w2_small).astype(jnp.bfloat16)          # (pp*C2, pp*3)
        self.b2 = jnp.tile(self.dec2_b, pp).reshape(1, pp * 3)

    # ------------------------------------------------------------------ fused
    def forward(self, x, actions, steps=None):
        n, cin, h, w = x.shape
        assert cin == 3 and h % PATCH == 0 and w % PATCH == 0
        gh, gw = h // PATCH, w // PATCH
        p = n * gh * gw
        rows = ((p + 7) // 8) * 8                 # pad rows to sublane multiple
        c, a, c2 = self.C, self.A, self.C2
        pp = PATCH * PATCH
        steps = int(steps) if steps is not None else int(w)  # torch: input.shape[3]

        # ---- glue: non-overlapping 10x10 patches + flattened actions, fused
        patches = x.reshape(n, 3, gh, PATCH, gw, PATCH).transpose(
            0, 2, 4, 1, 3, 5).reshape(p, 3 * pp)
        act2d = actions.transpose(0, 2, 3, 1).reshape(p, a)
        xin = jnp.concatenate([patches, act2d], axis=1)          # (p, 300+A)
        if rows != p:
            xin = jnp.pad(xin, ((0, rows - p), (0, 0)))

        mask = _make_tap_mask(n, gh, gw, c, rows)                # (rows, 9C)

        kern = functools.partial(
            _engine_kernel, C=c, gw=gw, steps=steps,
            sat_limit=self.sat_limit, inv_norm=1.0 / float(p * c))

        const2d = lambda shape: pl.BlockSpec(shape, lambda i: (0, 0))
        obs_flat, sat = pl.pallas_call(
            kern,
            out_shape=(jax.ShapeDtypeStruct((rows, pp * 3), jnp.float32),
                       jax.ShapeDtypeStruct((1, 1), jnp.float32)),
            grid_spec=pltpu.PrefetchScalarGridSpec(
                num_scalar_prefetch=0,
                grid=(1,),
                in_specs=[
                    const2d((rows, 3 * pp + a)),      # xin
                    const2d((3 * pp + a, c)),         # w_in
                    const2d((1, c)),                  # b_in
                    const2d((rows, 9 * c)),           # tap mask
                    const2d((9 * c, 2 * c)),          # w_gate
                    const2d((1, 2 * c)),              # b_gate
                    const2d((9 * c, c)),              # w_cand
                    const2d((1, c)),                  # b_cand
                    const2d((c, pp * c2)),            # w_dec1
                    const2d((1, pp * c2)),            # b_dec1
                    const2d((pp * c2, pp * 3)),       # w_dec2 (block-diag)
                    const2d((1, pp * 3)),             # b_dec2
                ],
                out_specs=[
                    const2d((rows, pp * 3)),          # decoded observations
                    const2d((1, 1)),                  # saturation cost
                ],
                scratch_shapes=[pltpu.VMEM((rows, c), jnp.float32),   # state
                                pltpu.VMEM((rows, c), jnp.float32)],  # sat acc
            ),
            compiler_params=pltpu.CompilerParams(
                dimension_semantics=("arbitrary",)),
        )(xin, self.w_in, self.b_in, mask,
          self.w_gate, self.b_gate, self.w_cand, self.b_cand,
          self.w1, self.b1, self.w2, self.b2)

        obs_pred = obs_flat[:p].reshape(n, gh, gw, PATCH, PATCH, 3).transpose(
            0, 5, 1, 3, 2, 4).reshape(n, 3, h, w)

        outputs = {
            "observation_predictions": obs_pred,
            # TODO(synk): PoolingRewardDecoder definition not provided.
            "reward_predictions": None,
        }
        return outputs, sat[0, 0]

    # ---------------- pure-JAX reference (for verification only) -------------
    # Same math at matched precision: bf16 operands, f32 accumulation.
    def reference_forward(self, x, actions, steps=None):
        n, _, h, w = x.shape
        steps = int(steps) if steps is not None else int(w)
        dn = ("NHWC", "HWIO", "NHWC")
        bf = jnp.bfloat16

        def conv(z, wt, strides, padding):
            return lax.conv_general_dilated(
                z.astype(bf), jnp.transpose(wt, (2, 3, 1, 0)).astype(bf),
                strides, padding, dimension_numbers=dn,
                preferred_element_type=jnp.float32)

        xx = jnp.transpose(x, (0, 2, 3, 1))
        s = conv(xx, self.enc_w, (PATCH, PATCH), "VALID") + self.enc_b
        aa = jnp.transpose(actions, (0, 2, 3, 1))
        s = s + conv(aa, self.act_w, (1, 1), "VALID") + self.act_b

        def conv3(z, wt, bt):
            return conv(z, wt, (1, 1), "SAME") + bt

        sat_total = jnp.float32(0.0)
        for _ in range(steps):
            u_pre = conv3(s, self.wu_t, self.bu_t)
            r_pre = conv3(s, self.wr_t, self.br_t)
            u = jnp.clip(1.2 * jax.nn.sigmoid(u_pre) - 0.1, 0.0, 1.0)
            r = jnp.clip(1.2 * jax.nn.sigmoid(r_pre) - 0.1, 0.0, 1.0)
            c_pre = conv3(r * s, self.wc_t, self.bc_t)
            cand = jnp.tanh(c_pre)
            sat_total = sat_total + jnp.mean(
                jnp.maximum(jnp.abs(u_pre) - self.sat_limit, 0.0)
                + jnp.maximum(jnp.abs(r_pre) - self.sat_limit, 0.0)
                + jnp.maximum(jnp.abs(c_pre) - self.sat_limit, 0.0))
            s = u * s + (1.0 - u) * cand

        hdec = jnp.einsum("nabc,cokl->nabklo", s.astype(bf),
                          self.dec1_w.astype(bf),
                          preferred_element_type=jnp.float32) + self.dec1_b
        hdec = jnp.maximum(hdec, 0.0)
        o = jnp.einsum("nabklh,jh->nabklj", hdec.astype(bf),
                       self.dec2_w[:, :, 0, 0].astype(bf),
                       preferred_element_type=jnp.float32) + self.dec2_b
        o = jax.nn.sigmoid(o)
        obs = o.transpose(0, 5, 1, 3, 2, 4).reshape(n, 3, h, w)
        return obs, sat_total


# ----------------------------------------------------------------------------
if __name__ == "__main__":
    N, H, W = 2, 20, 20          # image must be a multiple of the 10x10 tile
    STATE_CHANNELS = 32
    REWARD_STATE_CHANNELS = 16
    NUM_ACTIONS = 4
    GH, GW = H // PATCH, W // PATCH

    key = jax.random.PRNGKey(0)
    kx, ka, kp = jax.random.split(key, 3)
    x = jax.random.uniform(kx, (N, 3, H, W), jnp.float32)          # NCHW image
    # one-hot action planes tiled over the state grid (N, A, H/10, W/10)
    act_idx = jax.random.randint(ka, (N,), 0, NUM_ACTIONS)
    actions = jax.nn.one_hot(act_idx, NUM_ACTIONS, dtype=jnp.float32)
    actions = jnp.broadcast_to(actions[:, :, None, None],
                               (N, NUM_ACTIONS, GH, GW))

    engine = NeuralGameEnginePallas(STATE_CHANNELS, REWARD_STATE_CHANNELS,
                                    NUM_ACTIONS, saturation_limit=0.9, key=kp)

    outputs, sat_cost = engine.forward(x, actions)        # steps=None -> W=20
    obs_pred = jax.block_until_ready(outputs["observation_predictions"])
    sat_cost = jax.block_until_ready(sat_cost)

    # sanity-check against a pure-JAX reference at matched (bf16 operand,
    # f32 accumulation) precision
    ref_obs, ref_sat = engine.reference_forward(x, actions)
    ref_obs = jax.block_until_ready(ref_obs)
    assert obs_pred.shape == (N, 3, H, W)
    assert np.allclose(np.asarray(obs_pred), np.asarray(ref_obs), atol=2e-2)
    assert np.allclose(float(sat_cost), float(ref_sat), rtol=2e-2, atol=2e-2)

    print("KERNEL_OK")
</pallas_src>

<mosaic_0001>
module attributes {stable_mosaic.version = 11 : i64} {
  func.func @_engine_kernel(%arg0: i32, %arg1: memref<8x304xf32, #tpu.memory_space<vmem>>, %arg2: memref<304x32xbf16, #tpu.memory_space<vmem>>, %arg3: memref<1x32xf32, #tpu.memory_space<vmem>>, %arg4: memref<8x288xf32, #tpu.memory_space<vmem>>, %arg5: memref<288x64xbf16, #tpu.memory_space<vmem>>, %arg6: memref<1x64xf32, #tpu.memory_space<vmem>>, %arg7: memref<288x32xbf16, #tpu.memory_space<vmem>>, %arg8: memref<1x32xf32, #tpu.memory_space<vmem>>, %arg9: memref<32x1600xbf16, #tpu.memory_space<vmem>>, %arg10: memref<1x1600xf32, #tpu.memory_space<vmem>>, %arg11: memref<1600x300xbf16, #tpu.memory_space<vmem>>, %arg12: memref<1x300xf32, #tpu.memory_space<vmem>>, %arg13: memref<8x300xf32, #tpu.memory_space<vmem>>, %arg14: memref<1x1xf32, #tpu.memory_space<vmem>>, %arg15: memref<8x32xf32, #tpu.memory_space<vmem>>, %arg16: memref<8x32xf32, #tpu.memory_space<vmem>>) attributes {dimension_semantics = [#tpu.dimension_semantics<arbitrary>], iteration_bounds = array<i64: 1>, scalar_prefetch = 0 : i64, scratch_operands = 2 : i64, tpu.core_type = #tpu.core_type<tc>, window_params = [{pipeline_mode = #tpu.pipeline_mode<synchronous>, transform_indices = @transform_0, window_bounds = array<i64: 8, 304>}, {pipeline_mode = #tpu.pipeline_mode<synchronous>, transform_indices = @transform_1, window_bounds = array<i64: 304, 32>}, {pipeline_mode = #tpu.pipeline_mode<synchronous>, transform_indices = @transform_2, window_bounds = array<i64: 1, 32>}, {pipeline_mode = #tpu.pipeline_mode<synchronous>, transform_indices = @transform_3, window_bounds = array<i64: 8, 288>}, {pipeline_mode = #tpu.pipeline_mode<synchronous>, transform_indices = @transform_4, window_bounds = array<i64: 288, 64>}, {pipeline_mode = #tpu.pipeline_mode<synchronous>, transform_indices = @transform_5, window_bounds = array<i64: 1, 64>}, {pipeline_mode = #tpu.pipeline_mode<synchronous>, transform_indices = @transform_6, window_bounds = array<i64: 288, 32>}, {pipeline_mode = #tpu.pipeline_mode<synchronous>, transform_indices = @transform_7, window_bounds = array<i64: 1, 32>}, {pipeline_mode = #tpu.pipeline_mode<synchronous>, transform_indices = @transform_8, window_bounds = array<i64: 32, 1600>}, {pipeline_mode = #tpu.pipeline_mode<synchronous>, transform_indices = @transform_9, window_bounds = array<i64: 1, 1600>}, {pipeline_mode = #tpu.pipeline_mode<synchronous>, transform_indices = @transform_10, window_bounds = array<i64: 1600, 300>}, {pipeline_mode = #tpu.pipeline_mode<synchronous>, transform_indices = @transform_11, window_bounds = array<i64: 1, 300>}, {pipeline_mode = #tpu.pipeline_mode<synchronous>, transform_indices = @transform_12, window_bounds = array<i64: 8, 300>}, {pipeline_mode = #tpu.pipeline_mode<synchronous>, transform_indices = @transform_13, window_bounds = array<i64: 1, 1>}]} {
    %c0 = arith.constant 0 : index
    %c0_0 = arith.constant 0 : index
    %0 = vector.load %arg1[%c0, %c0_0] : memref<8x304xf32, #tpu.memory_space<vmem>>, vector<8x304xf32>
    %1 = arith.truncf %0 : vector<8x304xf32> to vector<8x304xbf16>
    %c0_1 = arith.constant 0 : index
    %c0_2 = arith.constant 0 : index
    %2 = vector.load %arg2[%c0_1, %c0_2] : memref<304x32xbf16, #tpu.memory_space<vmem>>, vector<304x32xbf16>
    %cst = arith.constant dense<0.000000e+00> : vector<8x32xf32>
    %3 = tpu.matmul %1, %2, %cst {dimension_numbers = #tpu.dot_dimension_numbers<[1], [0], [0], [1], [0, 0, 1, 1], [], []>} : vector<8x304xbf16>, vector<304x32xbf16>, vector<8x32xf32> -> vector<8x32xf32>
    %c0_3 = arith.constant 0 : index
    %c0_4 = arith.constant 0 : index
    %4 = vector.load %arg3[%c0_3, %c0_4] : memref<1x32xf32, #tpu.memory_space<vmem>>, vector<1x32xf32>
    %5 = vector.broadcast %4 : vector<1x32xf32> to vector<8x32xf32>
    %6 = arith.addf %3, %5 : vector<8x32xf32>
    %c0_5 = arith.constant 0 : index
    %c0_6 = arith.constant 0 : index
    %7 = vector.load %arg15[%c0_5, %c0_6] : memref<8x32xf32, #tpu.memory_space<vmem>>, vector<8x32xf32>
    tpu.vector_store %arg15[%c0_5, %c0_6], %6 {strides = array<i32>} : memref<8x32xf32, #tpu.memory_space<vmem>>, vector<8x32xf32>,
    %cst_7 = arith.constant 0.000000e+00 : f32
    %8 = vector.broadcast %cst_7 : f32 to vector<8x32xf32>
    %c0_8 = arith.constant 0 : index
    %c0_9 = arith.constant 0 : index
    %9 = vector.load %arg16[%c0_8, %c0_9] : memref<8x32xf32, #tpu.memory_space<vmem>>, vector<8x32xf32>
    tpu.vector_store %arg16[%c0_8, %c0_9], %8 {strides = array<i32>} : memref<8x32xf32, #tpu.memory_space<vmem>>, vector<8x32xf32>,
    %c0_i32 = arith.constant 0 : i32
    %c20_i32 = arith.constant 20 : i32
    %10 = arith.addi %c0_i32, %c20_i32 : i32
    %c1_i32 = arith.constant 1 : i32
    scf.for %arg17 = %c0_i32 to %10 step %c1_i32  : i32 {
      %c0_34 = arith.constant 0 : index
      %c0_35 = arith.constant 0 : index
      %44 = vector.load %arg15[%c0_34, %c0_35] : memref<8x32xf32, #tpu.memory_space<vmem>>, vector<8x32xf32>
      %cst_36 = arith.constant 0.000000e+00 : f32
      %45 = vector.broadcast %cst_36 : f32 to vector<3x32xf32>
      %46 = vector.extract_strided_slice %44 {offsets = [0, 0], sizes = [5, 32], strides = [1, 1]} : vector<8x32xf32> to vector<5x32xf32>
      %47 = tpu.concatenate %45, %46 in 0 : vector<3x32xf32>, vector<5x32xf32> -> vector<8x32xf32>
      %cst_37 = arith.constant 0.000000e+00 : f32
      %48 = vector.broadcast %cst_37 : f32 to vector<2x32xf32>
      %49 = vector.extract_strided_slice %44 {offsets = [0, 0], sizes = [6, 32], strides = [1, 1]} : vector<8x32xf32> to vector<6x32xf32>
      %50 = tpu.concatenate %48, %49 in 0 : vector<2x32xf32>, vector<6x32xf32> -> vector<8x32xf32>
      %cst_38 = arith.constant 0.000000e+00 : f32
      %51 = vector.broadcast %cst_38 : f32 to vector<1x32xf32>
      %52 = vector.extract_strided_slice %44 {offsets = [0, 0], sizes = [7, 32], strides = [1, 1]} : vector<8x32xf32> to vector<7x32xf32>
      %53 = tpu.concatenate %51, %52 in 0 : vector<1x32xf32>, vector<7x32xf32> -> vector<8x32xf32>
      %cst_39 = arith.constant 0.000000e+00 : f32
      %54 = vector.broadcast %cst_39 : f32 to vector<1x32xf32>
      %55 = vector.extract_strided_slice %44 {offsets = [1, 0], sizes = [7, 32], strides = [1, 1]} : vector<8x32xf32> to vector<7x32xf32>
      %56 = tpu.concatenate %55, %54 in 0 : vector<7x32xf32>, vector<1x32xf32> -> vector<8x32xf32>
      %cst_40 = arith.constant 0.000000e+00 : f32
      %57 = vector.broadcast %cst_40 : f32 to vector<2x32xf32>
      %58 = vector.extract_strided_slice %44 {offsets = [2, 0], sizes = [6, 32], strides = [1, 1]} : vector<8x32xf32> to vector<6x32xf32>
      %59 = tpu.concatenate %58, %57 in 0 : vector<6x32xf32>, vector<2x32xf32> -> vector<8x32xf32>
      %cst_41 = arith.constant 0.000000e+00 : f32
      %60 = vector.broadcast %cst_41 : f32 to vector<3x32xf32>
      %61 = vector.extract_strided_slice %44 {offsets = [3, 0], sizes = [5, 32], strides = [1, 1]} : vector<8x32xf32> to vector<5x32xf32>
      %62 = tpu.concatenate %61, %60 in 0 : vector<5x32xf32>, vector<3x32xf32> -> vector<8x32xf32>
      %63 = tpu.concatenate %47, %50, %53, %53, %44, %56, %56, %59, %62 in 1 : vector<8x32xf32>, vector<8x32xf32>, vector<8x32xf32>, vector<8x32xf32>, vector<8x32xf32>, vector<8x32xf32>, vector<8x32xf32>, vector<8x32xf32>, vector<8x32xf32> -> vector<8x288xf32>
      %c0_42 = arith.constant 0 : index
      %c0_43 = arith.constant 0 : index
      %64 = vector.load %arg4[%c0_42, %c0_43] : memref<8x288xf32, #tpu.memory_space<vmem>>, vector<8x288xf32>
      %65 = arith.mulf %63, %64 : vector<8x288xf32>
      %66 = arith.truncf %65 : vector<8x288xf32> to vector<8x288xbf16>
      %c0_44 = arith.constant 0 : index
      %c0_45 = arith.constant 0 : index
      %67 = vector.load %arg5[%c0_44, %c0_45] : memref<288x64xbf16, #tpu.memory_space<vmem>>, vector<288x64xbf16>
      %cst_46 = arith.constant dense<0.000000e+00> : vector<8x64xf32>
      %68 = tpu.matmul %66, %67, %cst_46 {dimension_numbers = #tpu.dot_dimension_numbers<[1], [0], [0], [1], [0, 0, 1, 1], [], []>} : vector<8x288xbf16>, vector<288x64xbf16>, vector<8x64xf32> -> vector<8x64xf32>
      %c0_47 = arith.constant 0 : index
      %c0_48 = arith.constant 0 : index
      %69 = vector.load %arg6[%c0_47, %c0_48] : memref<1x64xf32, #tpu.memory_space<vmem>>, vector<1x64xf32>
      %70 = vector.broadcast %69 : vector<1x64xf32> to vector<8x64xf32>
      %71 = arith.addf %68, %70 : vector<8x64xf32>
      %72 = vector.extract_strided_slice %71 {offsets = [0, 0], sizes = [8, 32], strides = [1, 1]} : vector<8x64xf32> to vector<8x32xf32>
      %73 = vector.extract_strided_slice %71 {offsets = [0, 32], sizes = [8, 32], strides = [1, 1]} : vector<8x64xf32> to vector<8x32xf32>
      %74 = arith.negf %72 : vector<8x32xf32>
      %75 = math.exp %74 : vector<8x32xf32>
      %cst_49 = arith.constant 1.000000e+00 : f32
      %76 = vector.broadcast %cst_49 : f32 to vector<8x32xf32>
      %77 = arith.addf %76, %75 : vector<8x32xf32>
      %78 = arith.divf %76, %77 : vector<8x32xf32>
      %cst_50 = arith.constant 1.200000e+00 : f32
      %79 = vector.broadcast %cst_50 : f32 to vector<8x32xf32>
      %80 = arith.mulf %79, %78 : vector<8x32xf32>
      %cst_51 = arith.constant 1.000000e-01 : f32
      %81 = vector.broadcast %cst_51 : f32 to vector<8x32xf32>
      %82 = arith.subf %80, %81 : vector<8x32xf32>
      %cst_52 = arith.constant 0.000000e+00 : f32
      %cst_53 = arith.constant 1.000000e+00 : f32
      %83 = vector.broadcast %cst_52 : f32 to vector<8x32xf32>
      %84 = arith.maximumf %83, %82 : vector<8x32xf32>
      %85 = vector.broadcast %cst_53 : f32 to vector<8x32xf32>
      %86 = arith.minimumf %85, %84 : vector<8x32xf32>
      %87 = arith.negf %73 : vector<8x32xf32>
      %88 = math.exp %87 : vector<8x32xf32>
      %cst_54 = arith.constant 1.000000e+00 : f32
      %89 = vector.broadcast %cst_54 : f32 to vector<8x32xf32>
      %90 = arith.addf %89, %88 : vector<8x32xf32>
      %91 = arith.divf %89, %90 : vector<8x32xf32>
      %cst_55 = arith.constant 1.200000e+00 : f32
      %92 = vector.broadcast %cst_55 : f32 to vector<8x32xf32>
      %93 = arith.mulf %92, %91 : vector<8x32xf32>
      %cst_56 = arith.constant 1.000000e-01 : f32
      %94 = vector.broadcast %cst_56 : f32 to vector<8x32xf32>
      %95 = arith.subf %93, %94 : vector<8x32xf32>
      %cst_57 = arith.constant 0.000000e+00 : f32
      %cst_58 = arith.constant 1.000000e+00 : f32
      %96 = vector.broadcast %cst_57 : f32 to vector<8x32xf32>
      %97 = arith.maximumf %96, %95 : vector<8x32xf32>
      %98 = vector.broadcast %cst_58 : f32 to vector<8x32xf32>
      %99 = arith.minimumf %98, %97 : vector<8x32xf32>
      %100 = arith.mulf %99, %44 : vector<8x32xf32>
      %cst_59 = arith.constant 0.000000e+00 : f32
      %101 = vector.broadcast %cst_59 : f32 to vector<3x32xf32>
      %102 = vector.extract_strided_slice %100 {offsets = [0, 0], sizes = [5, 32], strides = [1, 1]} : vector<8x32xf32> to vector<5x32xf32>
      %103 = tpu.concatenate %101, %102 in 0 : vector<3x32xf32>, vector<5x32xf32> -> vector<8x32xf32>
      %cst_60 = arith.constant 0.000000e+00 : f32
      %104 = vector.broadcast %cst_60 : f32 to vector<2x32xf32>
      %105 = vector.extract_strided_slice %100 {offsets = [0, 0], sizes = [6, 32], strides = [1, 1]} : vector<8x32xf32> to vector<6x32xf32>
      %106 = tpu.concatenate %104, %105 in 0 : vector<2x32xf32>, vector<6x32xf32> -> vector<8x32xf32>
      %cst_61 = arith.constant 0.000000e+00 : f32
      %107 = vector.broadcast %cst_61 : f32 to vector<1x32xf32>
      %108 = vector.extract_strided_slice %100 {offsets = [0, 0], sizes = [7, 32], strides = [1, 1]} : vector<8x32xf32> to vector<7x32xf32>
      %109 = tpu.concatenate %107, %108 in 0 : vector<1x32xf32>, vector<7x32xf32> -> vector<8x32xf32>
      %cst_62 = arith.constant 0.000000e+00 : f32
      %110 = vector.broadcast %cst_62 : f32 to vector<1x32xf32>
      %111 = vector.extract_strided_slice %100 {offsets = [1, 0], sizes = [7, 32], strides = [1, 1]} : vector<8x32xf32> to vector<7x32xf32>
      %112 = tpu.concatenate %111, %110 in 0 : vector<7x32xf32>, vector<1x32xf32> -> vector<8x32xf32>
      %cst_63 = arith.constant 0.000000e+00 : f32
      %113 = vector.broadcast %cst_63 : f32 to vector<2x32xf32>
      %114 = vector.extract_strided_slice %100 {offsets = [2, 0], sizes = [6, 32], strides = [1, 1]} : vector<8x32xf32> to vector<6x32xf32>
      %115 = tpu.concatenate %114, %113 in 0 : vector<6x32xf32>, vector<2x32xf32> -> vector<8x32xf32>
      %cst_64 = arith.constant 0.000000e+00 : f32
      %116 = vector.broadcast %cst_64 : f32 to vector<3x32xf32>
      %117 = vector.extract_strided_slice %100 {offsets = [3, 0], sizes = [5, 32], strides = [1, 1]} : vector<8x32xf32> to vector<5x32xf32>
      %118 = tpu.concatenate %117, %116 in 0 : vector<5x32xf32>, vector<3x32xf32> -> vector<8x32xf32>
      %119 = tpu.concatenate %103, %106, %109, %109, %100, %112, %112, %115, %118 in 1 : vector<8x32xf32>, vector<8x32xf32>, vector<8x32xf32>, vector<8x32xf32>, vector<8x32xf32>, vector<8x32xf32>, vector<8x32xf32>, vector<8x32xf32>, vector<8x32xf32> -> vector<8x288xf32>
      %c0_65 = arith.constant 0 : index
      %c0_66 = arith.constant 0 : index
      %120 = vector.load %arg4[%c0_65, %c0_66] : memref<8x288xf32, #tpu.memory_space<vmem>>, vector<8x288xf32>
      %121 = arith.mulf %119, %120 : vector<8x288xf32>
      %122 = arith.truncf %121 : vector<8x288xf32> to vector<8x288xbf16>
      %c0_67 = arith.constant 0 : index
      %c0_68 = arith.constant 0 : index
      %123 = vector.load %arg7[%c0_67, %c0_68] : memref<288x32xbf16, #tpu.memory_space<vmem>>, vector<288x32xbf16>
      %cst_69 = arith.constant dense<0.000000e+00> : vector<8x32xf32>
      %124 = tpu.matmul %122, %123, %cst_69 {dimension_numbers = #tpu.dot_dimension_numbers<[1], [0], [0], [1], [0, 0, 1, 1], [], []>} : vector<8x288xbf16>, vector<288x32xbf16>, vector<8x32xf32> -> vector<8x32xf32>
      %c0_70 = arith.constant 0 : index
      %c0_71 = arith.constant 0 : index
      %125 = vector.load %arg8[%c0_70, %c0_71] : memref<1x32xf32, #tpu.memory_space<vmem>>, vector<1x32xf32>
      %126 = vector.broadcast %125 : vector<1x32xf32> to vector<8x32xf32>
      %127 = arith.addf %124, %126 : vector<8x32xf32>
      %128 = math.tanh %127 : vector<8x32xf32>
      %c0_72 = arith.constant 0 : index
      %c0_73 = arith.constant 0 : index
      %129 = vector.load %arg16[%c0_72, %c0_73] : memref<8x32xf32, #tpu.memory_space<vmem>>, vector<8x32xf32>
      %130 = math.absf %72 : vector<8x32xf32>
      %cst_74 = arith.constant 0.899999976 : f32
      %131 = vector.broadcast %cst_74 : f32 to vector<8x32xf32>
      %132 = arith.subf %130, %131 : vector<8x32xf32>
      %cst_75 = arith.constant 0.000000e+00 : f32
      %133 = vector.broadcast %cst_75 : f32 to vector<8x32xf32>
      %134 = arith.maximumf %132, %133 : vector<8x32xf32>
      %135 = math.absf %73 : vector<8x32xf32>
      %cst_76 = arith.constant 0.899999976 : f32
      %136 = vector.broadcast %cst_76 : f32 to vector<8x32xf32>
      %137 = arith.subf %135, %136 : vector<8x32xf32>
      %cst_77 = arith.constant 0.000000e+00 : f32
      %138 = vector.broadcast %cst_77 : f32 to vector<8x32xf32>
      %139 = arith.maximumf %137, %138 : vector<8x32xf32>
      %140 = arith.addf %134, %139 : vector<8x32xf32>
      %141 = math.absf %127 : vector<8x32xf32>
      %cst_78 = arith.constant 0.899999976 : f32
      %142 = vector.broadcast %cst_78 : f32 to vector<8x32xf32>
      %143 = arith.subf %141, %142 : vector<8x32xf32>
      %cst_79 = arith.constant 0.000000e+00 : f32
      %144 = vector.broadcast %cst_79 : f32 to vector<8x32xf32>
      %145 = arith.maximumf %143, %144 : vector<8x32xf32>
      %146 = arith.addf %140, %145 : vector<8x32xf32>
      %147 = arith.addf %129, %146 : vector<8x32xf32>
      %c0_80 = arith.constant 0 : index
      %c0_81 = arith.constant 0 : index
      %148 = vector.load %arg16[%c0_80, %c0_81] : memref<8x32xf32, #tpu.memory_space<vmem>>, vector<8x32xf32>
      tpu.vector_store %arg16[%c0_80, %c0_81], %147 {strides = array<i32>} : memref<8x32xf32, #tpu.memory_space<vmem>>, vector<8x32xf32>,
      %149 = arith.mulf %86, %44 : vector<8x32xf32>
      %cst_82 = arith.constant 1.000000e+00 : f32
      %150 = vector.broadcast %cst_82 : f32 to vector<8x32xf32>
      %151 = arith.subf %150, %86 : vector<8x32xf32>
      %152 = arith.mulf %151, %128 : vector<8x32xf32>
      %153 = arith.addf %149, %152 : vector<8x32xf32>
      %c0_83 = arith.constant 0 : index
      %c0_84 = arith.constant 0 : index
      %154 = vector.load %arg15[%c0_83, %c0_84] : memref<8x32xf32, #tpu.memory_space<vmem>>, vector<8x32xf32>
      tpu.vector_store %arg15[%c0_83, %c0_84], %153 {strides = array<i32>} : memref<8x32xf32, #tpu.memory_space<vmem>>, vector<8x32xf32>,
    }
    %c0_10 = arith.constant 0 : index
    %c128 = arith.constant 128 : index
    %11 = vector.load %arg4[%c0_10, %c128] : memref<8x288xf32, #tpu.memory_space<vmem>>, vector<8x32xf32>
    %cst_11 = arith.constant 0.000000e+00 : f32
    %12 = vector.broadcast %cst_11 : f32 to vector<1x1xf32>
    %c0_12 = arith.constant 0 : index
    %c0_13 = arith.constant 0 : index
    %13 = vector.load %arg16[%c0_12, %c0_13] : memref<8x32xf32, #tpu.memory_space<vmem>>, vector<8x32xf32>
    %14 = arith.mulf %13, %11 : vector<8x32xf32>
    %15 = vector.shape_cast %14 : vector<8x32xf32> to vector<1x8x32xf32>
    %cst_14 = arith.constant dense<0.000000e+00> : vector<1xf32>
    %16 = vector.multi_reduction <add>, %15, %cst_14 [1, 2] : vector<1x8x32xf32> to vector<1xf32>
    %17 = vector.shape_cast %16 : vector<1xf32> to vector<1x1x1xf32>
    %18 = vector.extract %17[0, 0, 0] : f32 from vector<1x1x1xf32>
    %cst_15 = arith.constant 3.906250e-03 : f32
    %19 = arith.mulf %18, %cst_15 : f32
    %20 = vector.broadcast %19 : f32 to vector<1x1xf32>
    %21 = arith.addf %12, %20 : vector<1x1xf32>
    %c0_16 = arith.constant 0 : index
    %c0_17 = arith.constant 0 : index
    %22 = vector.load %arg14[%c0_16, %c0_17] : memref<1x1xf32, #tpu.memory_space<vmem>>, vector<1x1xf32>
    tpu.vector_store %arg14[%c0_16, %c0_17], %21 {strides = array<i32>} : memref<1x1xf32, #tpu.memory_space<vmem>>, vector<1x1xf32>,
    %c0_18 = arith.constant 0 : index
    %c0_19 = arith.constant 0 : index
    %23 = vector.load %arg15[%c0_18, %c0_19] : memref<8x32xf32, #tpu.memory_space<vmem>>, vector<8x32xf32>
    %24 = arith.truncf %23 : vector<8x32xf32> to vector<8x32xbf16>
    %c0_20 = arith.constant 0 : index
    %c0_21 = arith.constant 0 : index
    %25 = vector.load %arg9[%c0_20, %c0_21] : memref<32x1600xbf16, #tpu.memory_space<vmem>>, vector<32x1600xbf16>
    %cst_22 = arith.constant dense<0.000000e+00> : vector<8x1600xf32>
    %26 = tpu.matmul %24, %25, %cst_22 {dimension_numbers = #tpu.dot_dimension_numbers<[1], [0], [0], [1], [0, 0, 1, 1], [], []>} : vector<8x32xbf16>, vector<32x1600xbf16>, vector<8x1600xf32> -> vector<8x1600xf32>
    %c0_23 = arith.constant 0 : index
    %c0_24 = arith.constant 0 : index
    %27 = vector.load %arg10[%c0_23, %c0_24] : memref<1x1600xf32, #tpu.memory_space<vmem>>, vector<1x1600xf32>
    %28 = vector.broadcast %27 : vector<1x1600xf32> to vector<8x1600xf32>
    %29 = arith.addf %26, %28 : vector<8x1600xf32>
    %cst_25 = arith.constant 0.000000e+00 : f32
    %30 = vector.broadcast %cst_25 : f32 to vector<8x1600xf32>
    %31 = arith.maximumf %29, %30 : vector<8x1600xf32>
    %32 = arith.truncf %31 : vector<8x1600xf32> to vector<8x1600xbf16>
    %c0_26 = arith.constant 0 : index
    %c0_27 = arith.constant 0 : index
    %33 = vector.load %arg11[%c0_26, %c0_27] : memref<1600x300xbf16, #tpu.memory_space<vmem>>, vector<1600x300xbf16>
    %cst_28 = arith.constant dense<0.000000e+00> : vector<8x300xf32>
    %34 = tpu.matmul %32, %33, %cst_28 {dimension_numbers = #tpu.dot_dimension_numbers<[1], [0], [0], [1], [0, 0, 1, 1], [], []>} : vector<8x1600xbf16>, vector<1600x300xbf16>, vector<8x300xf32> -> vector<8x300xf32>
    %c0_29 = arith.constant 0 : index
    %c0_30 = arith.constant 0 : index
    %35 = vector.load %arg12[%c0_29, %c0_30] : memref<1x300xf32, #tpu.memory_space<vmem>>, vector<1x300xf32>
    %36 = vector.broadcast %35 : vector<1x300xf32> to vector<8x300xf32>
    %37 = arith.addf %34, %36 : vector<8x300xf32>
    %38 = arith.negf %37 : vector<8x300xf32>
    %39 = math.exp %38 : vector<8x300xf32>
    %cst_31 = arith.constant 1.000000e+00 : f32
    %40 = vector.broadcast %cst_31 : f32 to vector<8x300xf32>
    %41 = arith.addf %40, %39 : vector<8x300xf32>
    %42 = arith.divf %40, %41 : vector<8x300xf32>
    %c0_32 = arith.constant 0 : index
    %c0_33 = arith.constant 0 : index
    %43 = vector.load %arg13[%c0_32, %c0_33] : memref<8x300xf32, #tpu.memory_space<vmem>>, vector<8x300xf32>
    tpu.vector_store %arg13[%c0_32, %c0_33], %42 {strides = array<i32>} : memref<8x300xf32, #tpu.memory_space<vmem>>, vector<8x300xf32>,
    return
  }
  func.func @transform_0(%arg0: i32) -> (i32, i32) {
    %c0_i32 = arith.constant 0 : i32
    %c0_i32_0 = arith.constant 0 : i32
    %c0_i32_1 = arith.constant 0 : i32
    return %c0_i32, %c0_i32_0 : i32, i32
  }
  func.func @transform_1(%arg0: i32) -> (i32, i32) {
    %c0_i32 = arith.constant 0 : i32
    %c0_i32_0 = arith.constant 0 : i32
    %c0_i32_1 = arith.constant 0 : i32
    return %c0_i32, %c0_i32_0 : i32, i32
  }
  func.func @transform_2(%arg0: i32) -> (i32, i32) {
    %c0_i32 = arith.constant 0 : i32
    %c0_i32_0 = arith.constant 0 : i32
    %c0_i32_1 = arith.constant 0 : i32
    return %c0_i32, %c0_i32_0 : i32, i32
  }
  func.func @transform_3(%arg0: i32) -> (i32, i32) {
    %c0_i32 = arith.constant 0 : i32
    %c0_i32_0 = arith.constant 0 : i32
    %c0_i32_1 = arith.constant 0 : i32
    return %c0_i32, %c0_i32_0 : i32, i32
  }
  func.func @transform_4(%arg0: i32) -> (i32, i32) {
    %c0_i32 = arith.constant 0 : i32
    %c0_i32_0 = arith.constant 0 : i32
    %c0_i32_1 = arith.constant 0 : i32
    return %c0_i32, %c0_i32_0 : i32, i32
  }
  func.func @transform_5(%arg0: i32) -> (i32, i32) {
    %c0_i32 = arith.constant 0 : i32
    %c0_i32_0 = arith.constant 0 : i32
    %c0_i32_1 = arith.constant 0 : i32
    return %c0_i32, %c0_i32_0 : i32, i32
  }
  func.func @transform_6(%arg0: i32) -> (i32, i32) {
    %c0_i32 = arith.constant 0 : i32
    %c0_i32_0 = arith.constant 0 : i32
    %c0_i32_1 = arith.constant 0 : i32
    return %c0_i32, %c0_i32_0 : i32, i32
  }
  func.func @transform_7(%arg0: i32) -> (i32, i32) {
    %c0_i32 = arith.constant 0 : i32
    %c0_i32_0 = arith.constant 0 : i32
    %c0_i32_1 = arith.constant 0 : i32
    return %c0_i32, %c0_i32_0 : i32, i32
  }
  func.func @transform_8(%arg0: i32) -> (i32, i32) {
    %c0_i32 = arith.constant 0 : i32
    %c0_i32_0 = arith.constant 0 : i32
    %c0_i32_1 = arith.constant 0 : i32
    return %c0_i32, %c0_i32_0 : i32, i32
  }
  func.func @transform_9(%arg0: i32) -> (i32, i32) {
    %c0_i32 = arith.constant 0 : i32
    %c0_i32_0 = arith.constant 0 : i32
    %c0_i32_1 = arith.constant 0 : i32
    return %c0_i32, %c0_i32_0 : i32, i32
  }
  func.func @transform_10(%arg0: i32) -> (i32, i32) {
    %c0_i32 = arith.constant 0 : i32
    %c0_i32_0 = arith.constant 0 : i32
    %c0_i32_1 = arith.constant 0 : i32
    return %c0_i32, %c0_i32_0 : i32, i32
  }
  func.func @transform_11(%arg0: i32) -> (i32, i32) {
    %c0_i32 = arith.constant 0 : i32
    %c0_i32_0 = arith.constant 0 : i32
    %c0_i32_1 = arith.constant 0 : i32
    return %c0_i32, %c0_i32_0 : i32, i32
  }
  func.func @transform_12(%arg0: i32) -> (i32, i32) {
    %c0_i32 = arith.constant 0 : i32
    %c0_i32_0 = arith.constant 0 : i32
    %c0_i32_1 = arith.constant 0 : i32
    return %c0_i32, %c0_i32_0 : i32, i32
  }
  func.func @transform_13(%arg0: i32) -> (i32, i32) {
    %c0_i32 = arith.constant 0 : i32
    %c0_i32_0 = arith.constant 0 : i32
    %c0_i32_1 = arith.constant 0 : i32
    return %c0_i32, %c0_i32_0 : i32, i32
  }
}

</mosaic_0001>

<bundles_post_ra>
// kernel: tpu_custom_call.1
= control target key start
LH: loop header
LB: loop body
LE: loop exit
PB: predicated region body
PF: predicated region fallthrough
CT: control target
= control target key end

     0   :  { %19 = vsyncpa [#allocation5], 0  ;;  %s6960_s0 = inlined_call_operand.vmem [shape: f32[8,304], index: 0, kind: input, shape index: {}]   ;;  %s6961_s1 = inlined_call_operand.vmem [shape: bf16[304,32], index: 1, kind: input, shape index: {}]   ;;  %s6962_s2 = inlined_call_operand.vmem [shape: f32[1,32], index: 2, kind: input, shape index: {}]   ;;  %s6963_s3 = inlined_call_operand.vmem [shape: f32[8,288], index: 3, kind: input, shape index: {}]   ;;  %s6964_s4 = inlined_call_operand.vmem [shape: bf16[288,64], index: 4, kind: input, shape index: {}]   ;;  %s6965_s5 = inlined_call_operand.vmem [shape: f32[1,64], index: 5, kind: input, shape index: {}]   ;;  %s6966_s6 = inlined_call_operand.vmem [shape: bf16[288,32], index: 6, kind: input, shape index: {}]   ;;  %s6967_s7 = inlined_call_operand.vmem [shape: f32[1,32], index: 7, kind: input, shape index: {}]   ;;  %s6968_s8 = inlined_call_operand.vmem [shape: bf16[32,1600], index: 8, kind: input, shape index: {}]   ;;  %s6969_s9 = inlined_call_operand.vmem [shape: f32[1,1600], index: 9, kind: input, shape index: {}]   ;;  %s6970_s10 = inlined_call_operand.vmem [shape: bf16[1600,300], index: 10, kind: input, shape index: {}]   ;;  %s6971_s11 = inlined_call_operand.vmem [shape: f32[1,300], index: 11, kind: input, shape index: {}]   ;;  %s6972_s12 = inlined_call_operand.hbm [shape: f32[8,300], index: 12, kind: output, shape index: {0}]   ;;  %s6973_s13 = inlined_call_operand.hbm [shape: f32[1,1], index: 13, kind: output, shape index: {1}]  }
   0x1   :  { %20 = vsyncpa [#allocation7], 0  ;;  %v4849_v0 = vld [vmem:[%s6961_s1 + $0x40] sm:$0xff]   ;;  %v5416_v2 = vmov 0.0   ;;  %v4851_v3 = vld [vmem:[%s6961_s1 + $0x48] sm:$0xff]   ;;  %vm5417_vm0 = vmmov 0  }
   0x2   :  { %v4850_v1 = vld [vmem:[%s6961_s1] sm:$0xff]   ;;  %4761 = vmatprep.subr.bf16.mxu1 %v5416_v2  ;;  %4545 = vmatprep.subr.bf16.mxu0 %v4849_v0  ;;  %v4852_v4 = vld [vmem:[%s6961_s1 + $0x8] sm:$0xff]   ;;  %v4853_v5 = vld [vmem:[%s6961_s1 + $0x50] sm:$0xff]   ;;  %vm211_vm1 = vcmask 392192   ;;  %vm295_vm2 = vcmask 261120  }
   0x3   :  { %4767 = vmatprep.mubr.msk.bf16.mxu1 %vm5417_vm0, %v5416_v2  ;;  %4546 = vmatpush3.bf16.msra.mxu0 %v4850_v1  ;;  %v4854_v6 = vld [vmem:[%s6961_s1 + $0x10] sm:$0xff]   ;;  %v4855_v7 = vld [vmem:[%s6961_s1 + $0x58] sm:$0xff]   ;;  %v4857_v9 = vld [vmem:[%s6961_s1 + $0x60] sm:$0xff]   ;;  %297 = vst.msk [vmem:[#allocation3] sm:$0xff] %vm295_vm2, %v5416_v2 }
   0x4   :  { %4547 = vmatprep.subr.bf16.mxu0 %v4851_v3  ;;  %v4856_v8 = vld [vmem:[%s6961_s1 + $0x18] sm:$0xff]   ;;  %v4861_v10 = vld [vmem:[%s6961_s1 + $0x80] sm:$0xff]   ;;  %v4864_v12 = vld [vmem:[%s6961_s1 + $0x88] sm:$0xff]  }
   0x5   :  { %v4858_v11 = vld [vmem:[%s6961_s1 + $0x20] sm:$0xff]   ;;  %4762 = vmatpush3.bf16.msra.mxu1 %v4861_v10  ;;  %v4859_v13 = vld [vmem:[%s6961_s1 + $0x68] sm:$0xff]   ;;  %v4867_v16 = vld [vmem:[%s6961_s1 + $0x90] sm:$0xff]  }
   0x6   :  { %4763 = vmatprep.subr.bf16.mxu1 %v5416_v2  ;;  %v47_v14 = vld [vmem:[%s6960_s0 + $0x8] sm:$0xff]  ;;  %v48_v18 = vld [vmem:[%s6960_s0 + $0x10] sm:$0xff]  ;;  %v4865_v22 = vld [vmem:[%s6961_s1 + $0x78] sm:$0xff]  }
   0x7   :  { %4548 = vmatpush3.bf16.msra.mxu0 %v4852_v4  ;;  %v50_v15 = vpack.c.bf16 %v47_v14, %v47_v14  ;;  %v4860_v17 = vld [vmem:[%s6961_s1 + $0x28] sm:$0xff]   ;;  %v4862_v19 = vld [vmem:[%s6961_s1 + $0x70] sm:$0xff]   ;;  %v51_v20 = vpack.c.bf16 %v48_v18, %v48_v18  ;;  %v4866_v23 = vld [vmem:[%s6961_s1 + $0x38] sm:$0xff]  }
   0x8   :  { %4549 = vmatprep.subr.bf16.mxu0 %v4853_v5  ;;  %v4863_v21 = vld [vmem:[%s6961_s1 + $0x30] sm:$0xff]   ;;  %v46_v24 = vld [vmem:[%s6960_s0] sm:$0xff]  ;;  %s5573_s0 = smov 0  }
   0x9   :  { %4764 = vmatpush3.bf16.msra.mxu1 %v4864_v12  ;;  %247 = vmatprep.mubr.bf16.mxu0 %v50_v15  ;;  %v49_v25 = vpack.c.bf16 %v46_v24, %v46_v24  ;;  %v4142_v32 = vld [vmem:[%s6962_s2] ss:$0 sm:$0xff] }
   0xa   :  { %4765 = vmatprep.subr.bf16.mxu1 %v5416_v2 }
   0xb   :  { %4550 = vmatpush3.bf16.msra.mxu0 %v4854_v6 }
   0xc   :  { %4551 = vmatprep.subr.bf16.mxu0 %v4855_v7 }
   0xd   :  { %4766 = vmatpush3.bf16.msra.mxu1 %v4867_v16 }
   0xf   :  { %4552 = vmatpush3.bf16.msra.mxu0 %v4856_v8 }
  0x10   :  { %4553 = vmatprep.subr.bf16.mxu0 %v4857_v9  ;;  %4768 = vmatmul.mubr.msk.bf16.vlgmr.msra.gmra.mrb[0].mxu1 %vm211_vm1, %v51_v20 }
  0x13   :  { %4554 = vmatpush3.bf16.msra.mxu0 %v4858_v11 }
  0x14   :  { %4555 = vmatprep.subr.bf16.mxu0 %v4859_v13 }
  0x17   :  { %4556 = vmatpush3.bf16.msra.mxu0 %v4860_v17 }
  0x18   :  { %4557 = vmatprep.subr.bf16.mxu0 %v4862_v19 }
  0x1b   :  { %4558 = vmatpush3.bf16.msra.mxu0 %v4863_v21 }
  0x1c   :  { %4559 = vmatprep.subr.bf16.mxu0 %v4865_v22 }
  0x1f   :  { %4560 = vmatpush3.bf16.msra.mxu0 %v4866_v23 }
  0x22   :  { %248 = vmatmul.mubr.bf16.vlgmr.msra.gmra.mrb[0].mxu0 %v49_v25 }
  0xe3   :  { %v289_v26 = vpop.f32.mrb[0].mxu1 }
  0xe4   :  { %v4769_v27 = vpop.f32.mrb[1].mxu1 }
  0xe5   :  { %v292_v28 = vpop.f32.mrb[2].mxu1 }
  0xe6   :  { %v4770_v29 = vpop.f32.mrb[3].mxu1 }
  0xf5   :  { %v4561_v30 = vpop.f32.mrb[0].mxu0 }
  0xf6   :  { %v4562_v31 = vpop.f32.mrb[1].mxu0 }
  0xf7   :  { %v4563_v33 = vadd.f32 %v4562_v31, %v4561_v30  ;;  %v4564_v34 = vpop.f32.mrb[2].mxu0 }
  0xf8   :  { %v4565_v35 = vpop.f32.mrb[3].mxu0 }
  0xf9   :  { %v250_v36 = vadd.f32 %v4563_v33, %v4142_v32 }
  0xfb   :  { %v290_v37 = vadd.f32 %v289_v26, %v250_v36 }
  0xfd   :  { %296 = vst.msk [vmem:[#allocation2] sm:$0xff] %vm295_vm2, %v290_v37 }
  0xfe LB: > { %vm320_vm3 = vcmask 1046528   ;;  %vm316_vm4 = vcmask 1040384   ;;  %v4868_v42 = vld [vmem:[%s6964_s4 + $0x40] sm:$0xff]   ;;  %vm312_vm5 = vcmask 1041408   ;;  %s5418_s22 = smov 64   ;;  %s5419_s23 = smov 32   ;;  %s5414_s0 = sphi %s5573_s0, %s303_s0  }
  0xff   : > { %v4869_v43 = vld [vmem:[%s6964_s4] sm:$0xff]   ;;  %4571 = vmatprep.subr.bf16.mxu0 %v4868_v42  ;;  %v4870_v48 = vld [vmem:[%s6964_s4 + $0x48] sm:$0xff]   ;;  %vm324_vm6 = vcmask 1045504   ;;  %v4872_v50 = vld [vmem:[%s6964_s4 + $0x50] sm:$0xff]   ;;  %v5420_v53 = vmov 0.0   ;;  %vm5421_vm7 = vmmov 0  }
 0x100   : > { %4572 = vmatpush3.bf16.msra.mxu0 %v4869_v43  ;;  %v4871_v49 = vld [vmem:[%s6964_s4 + $0x8] sm:$0xff]   ;;  %v4873_v52 = vld [vmem:[%s6964_s4 + $0x10] sm:$0xff]   ;;  %4771 = vmatprep.subr.bf16.mxu1 %v5420_v53  ;;  %v4874_v54 = vld [vmem:[%s6964_s4 + $0x58] sm:$0xff]   ;;  %s5422_s17 = smov 96   ;;  %vm328_vm8 = vcmask 1044480   ;;  %vm308_vm9 = vcmask 1042432  }
 0x101   : > { %4573 = vmatprep.subr.bf16.mxu0 %v4870_v48  ;;  %4775 = vmatprep.mubr.msk.bf16.mxu1 %vm5421_vm7, %v5420_v53  ;;  %v4875_v55 = vld [vmem:[%s6964_s4 + $0x18] sm:$0xff]   ;;  %v4876_v56 = vld [vmem:[%s6964_s4 + $0x60] sm:$0xff]   ;;  %v4878_v59 = vld [vmem:[%s6964_s4 + $0x68] sm:$0xff]   ;;  %vm353_vm10 = vcmask 523264   ;;  %vm355_vm11 = vcmask 785408   ;;  %s303_s0 = sadd.s32 1, %s5414_s0  }
 0x102   : > { %v4877_v58 = vld [vmem:[%s6964_s4 + $0x20] sm:$0xff]   ;;  %v4879_v61 = vld [vmem:[%s6964_s4 + $0x28] sm:$0xff]   ;;  %v4880_v62 = vld [vmem:[%s6964_s4 + $0x70] sm:$0xff]   ;;  %p300_p0 = scmp.ge.s32.totalorder %s303_s0, 20  }
 0x103   : > { %v4882_v60 = vld [vmem:[%s6964_s4 + $0x80] sm:$0xff]   ;;  %v4885_v0 = vld [vmem:[%s6964_s4 + $0x88] sm:$0xff]   ;;  %v5650_v1 = vld [vmem:[%s6963_s3 + $0x10] sm:$0xff]  ;;  %vm951_vm12 = vcmask (%p300_p0), 0   ;;  %s5424_s27 = smov (%p300_p0), [#allocation6]  }
 0x104   : > { %v5578_v38 = vld [vmem:[#allocation2] sm:$0xff]  ;;  %4574 = vmatpush3.bf16.msra.mxu0 %v4871_v49  ;;  %4772 = vmatpush3.bf16.msra.mxu1 %v4882_v60  ;;  %v4881_v3 = vld [vmem:[%s6964_s4 + $0x30] sm:$0xff]   ;;  %v4883_v5 = vld [vmem:[%s6964_s4 + $0x78] sm:$0xff]   ;;  %s4125_s28 = sshll.u32 (%p300_p0), %s5424_s27, 4  ;;  %s4126_s28 = int_to_ptr.vmem [resolvable:$true] %s4125_s28 }
 0x105   : > { %v318_v39 = vrot.slane %v5578_v38, 1  ;;  %v314_v40 = vrot.slane %v5578_v38, 7  ;;  %v310_v41 = vrot.slane %v5578_v38, 6  ;;  %v322_v46 = vrot.slane %v5578_v38, 2  ;;  %4575 = vmatprep.subr.bf16.mxu0 %v4872_v50  ;;  %4773 = vmatprep.subr.bf16.mxu1 %v5420_v53  ;;  %v4884_v7 = vld [vmem:[%s6964_s4 + $0x38] sm:$0xff]   ;;  %v5672_v16 = vld [vmem:[%s6963_s3] sm:$0xff]  ;;  %p5365_p2 = scmp.lt.s32.totalorder (%p300_p0), %s4126_s28, %s4126_s28 }
 0x106   : > { %v326_v57 = vrot.slane %v5578_v38, 3  ;;  %v306_v8 = vrot.slane %v5578_v38, 5  ;;  %v5677_v17 = vld [vmem:[%s6963_s3 + $0x8] sm:$0xff]  ;;  %v4163_v34 = vld [vmem:[%s6965_s5] ss:$0 sm:$0xff]  ;;  %s5360_s29 = scalar_lea.vmem (%p300_p0), %s4126_s28, 16 }
 0x107   : > { %v321_v44 = vsel %vm320_vm3, %v318_v39, 0.0  ;;  %v317_v45 = vsel %vm316_vm4, 0.0, %v314_v40  ;;  %v313_v47 = vsel %vm312_vm5, 0.0, %v310_v41  ;;  %v325_v51 = vsel %vm324_vm6, %v322_v46, 0.0  ;;  %v4888_v60 = vld [vmem:[%s6966_s6 + $0x40] sm:$0xff]   ;;  %p5361_p1 = scmp.ne.s32.totalorder (%p300_p0), %s4126_s28, %s5360_s29  ;;  %s5364_s30 = scalar_lea.vmem (%p300_p0), %s4126_s28, 32 }
 0x108   : > { %345 = vrot.lane.b32.xlu1 %v321_v44, %s5418_s22  ;;  %342 = vrot.lane.b32.xlu0 %v321_v44, %s5419_s23  ;;  %v329_v63 = vsel %vm328_vm8, %v326_v57, 0.0  ;;  %v309_v11 = vsel %vm308_vm9, 0.0, %v306_v8  ;;  %v4887_v57 = vld [vmem:[%s6966_s6 + $0x88] sm:$0xff]   ;;  %v4896_v8 = vld [vmem:[%s6966_s6 + $0x60] sm:$0xff]   ;;  %p5366_p3 = scmp.lt.s32.totalorder (%p300_p0), %s5364_s30, %s5360_s29 }
 0x109   : > { %4576 = vmatpush3.bf16.msra.mxu0 %v4873_v52  ;;  %v365_v4 = vmul.f32 %v5650_v1, %v329_v63  ;;  %4774 = vmatpush3.bf16.msra.mxu1 %v4885_v0 }
 0x10a   : > { %4577 = vmatprep.subr.bf16.mxu0 %v4874_v54  ;;  %v4886_v54 = vld [vmem:[%s6966_s6 + $0x80] sm:$0xff]   ;;  %4596 = vmatprep.subr.bf16.mxu1 %v4888_v60  ;;  %p5367_p4 = por (%p300_p0), %p5366_p3, %p5365_p2 }
 0x10b   : > { %v368_v6 = vpack.c.bf16 %v365_v4, %v365_v4  ;;  %v4893_v4 = vld [vmem:[%s6966_s6 + $0x10] sm:$0xff]  }
 0x10c   : > { %335 = vrot.lane.b32.xlu1 %v317_v45, %s5418_s22  ;;  %331 = vrot.lane.b32.xlu0 %v313_v47, %s5419_s23  ;;  %p5368_p5 = pnand (%p300_p0), %p5367_p4, %p5361_p1 }
 0x10d   : > { %4578 = vmatpush3.bf16.msra.mxu0 %v4875_v55  ;;  %4776 = vmatmul.mubr.msk.bf16.vlgmr.msra.gmra.mrb[0].mxu1 %vm295_vm2, %v368_v6  ;;  %v4894_v6 = vld [vmem:[%s6966_s6 + $0x58] sm:$0xff]  }
 0x10e   : > { %4579 = vmatprep.subr.bf16.mxu0 %v4876_v56 }
 0x110   : > { %338 = vrot.lane.b32.xlu1 %v317_v45, %s5422_s17  ;;  %349 = vrot.lane.b32.xlu0 %v325_v51, %s5422_s17 }
 0x111   : > { %4580 = vmatpush3.bf16.msra.mxu0 %v4877_v58 }
 0x112   : > { %4581 = vmatprep.subr.bf16.mxu0 %v4878_v59 }
 0x114   : > { %613 = vrot.lane.b32.xlu0 %v5578_v38, %s5419_s23 }
 0x115   : > { %4582 = vmatpush3.bf16.msra.mxu0 %v4879_v61  ;;  %v4890_v61 = vld [vmem:[%s6966_s6 + $0x48] sm:$0xff]  }
 0x116   : > { %4583 = vmatprep.subr.bf16.mxu0 %v4880_v62  ;;  %v4891_v62 = vld [vmem:[%s6966_s6 + $0x8] sm:$0xff]  }
 0x119   : > { %4584 = vmatpush3.bf16.msra.mxu0 %v4881_v3  ;;  %v4892_v3 = vld [vmem:[%s6966_s6 + $0x50] sm:$0xff]  }
 0x11a   : > { %4585 = vmatprep.subr.bf16.mxu0 %v4883_v5 }
 0x11d   : > { %4586 = vmatpush3.bf16.msra.mxu0 %v4884_v7  ;;  %v4895_v7 = vld [vmem:[%s6966_s6 + $0x18] sm:$0xff]  }
 0x11e   : > { %4779 = vmatprep.subr.bf16.mxu0 %v5420_v53 }
 0x17a   : > { %v346_v9 = vpop.permute.xlu1 %345  ;;  %v343_v10 = vpop.permute.xlu0 %342 }
 0x17b   : > { %v357_v14 = vsel %vm295_vm2, %v5578_v38, %v343_v10  ;;  %v4898_v10 = vld [vmem:[%s6966_s6 + $0x68] sm:$0xff]  }
 0x17c   : > { %v358_v18 = vsel %vm353_vm10, %v357_v14, %v346_v9  ;;  %v4897_v9 = vld [vmem:[%s6966_s6 + $0x20] sm:$0xff]   ;;  %v4902_v14 = vld [vmem:[%s6966_s6 + $0x78] sm:$0xff]  }
 0x17e   : > { %v336_v12 = vpop.permute.xlu1 %335  ;;  %v332_v13 = vpop.permute.xlu0 %331 }
 0x17f   : > { %v352_v15 = vsel %vm295_vm2, %v309_v11, %v332_v13  ;;  %v4899_v11 = vld [vmem:[%s6966_s6 + $0x28] sm:$0xff]   ;;  %v4901_v13 = vld [vmem:[%s6966_s6 + $0x30] sm:$0xff]  }
 0x180   : > { %v354_v19 = vsel %vm353_vm10, %v352_v15, %v336_v12  ;;  %v4900_v12 = vld [vmem:[%s6966_s6 + $0x70] sm:$0xff]   ;;  %v4903_v15 = vld [vmem:[%s6966_s6 + $0x38] sm:$0xff]  }
 0x182   : > { %v339_v20 = vpop.permute.xlu1 %338  ;;  %v350_v21 = vpop.permute.xlu0 %349 }
 0x183   : > { %v356_v22 = vsel %vm355_vm11, %v354_v19, %v339_v20  ;;  %v359_v23 = vsel %vm355_vm11, %v358_v18, %v350_v21 }
 0x184   : > { %v363_v24 = vmul.f32 %v5672_v16, %v356_v22  ;;  %v364_v25 = vmul.f32 %v5677_v17, %v359_v23 }
 0x186   : > { %v366_v26 = vpack.c.bf16 %v363_v24, %v363_v24  ;;  %v367_v27 = vpack.c.bf16 %v364_v25, %v364_v25  ;;  %v614_v48 = vpop.permute.xlu0 %613 }
 0x188   : > { %555 = vmatprep.mubr.bf16.mxu0 %v367_v27 }
 0x189   : > { %556 = vmatmul.mubr.bf16.vlgmr.msra.gmra.mrb[0].mxu0 %v366_v26 }
 0x18a   : > { %4783 = vmatprep.mubr.msk.bf16.mxu0 %vm5421_vm7, %v5420_v53  ;;  %4780 = vmatpush3.bf16.msra.mxu0 %v4886_v54 }
 0x18b   : > { %4781 = vmatprep.subr.bf16.mxu0 %v5420_v53  ;;  %v4889_v53 = vld [vmem:[%s6966_s6] sm:$0xff]  }
 0x18c   : > { %4597 = vmatpush3.bf16.msra.mxu1 %v4889_v53 }
 0x18d   : > { %4598 = vmatprep.subr.bf16.mxu1 %v4890_v61 }
 0x18e   : > { %4782 = vmatpush3.bf16.msra.mxu0 %v4887_v57 }
 0x190   : > { %4599 = vmatpush3.bf16.msra.mxu1 %v4891_v62  ;;  %v915_v62 = vld [vmem:[#allocation3] sm:$0xff] }
 0x191   : > { %4600 = vmatprep.subr.bf16.mxu1 %v4892_v3 }
 0x194   : > { %4601 = vmatpush3.bf16.msra.mxu1 %v4893_v4 }
 0x195   : > { %4602 = vmatprep.subr.bf16.mxu1 %v4894_v6 }
 0x198   : > { %4603 = vmatpush3.bf16.msra.mxu1 %v4895_v7 }
 0x199   : > { %4604 = vmatprep.subr.bf16.mxu1 %v4896_v8  ;;  %v4910_v8 = vld [vmem:[%s6968_s8 + $0x4] ss:$52 sps:$4 sm:$0xff] (%p300_p0)  }
 0x19a   :  { %1187 = vmatprep.subr.bf16.mxu0 (%p300_p0), %v4910_v8  ;;  %v5008_v8 = vld [vmem:[%s6970_s10 + $0x258] ss:$12 sps:$4 sm:$0xff] (%p300_p0)  }
 0x19c   : > { %4605 = vmatpush3.bf16.msra.mxu1 %v4897_v9  ;;  %v4912_v9 = vld [vmem:[%s6968_s8] ss:$52 sps:$4 sm:$0xff] (%p300_p0)  }
 0x19d   : > { %4606 = vmatprep.subr.bf16.mxu1 %v4898_v10  ;;  %v5423_v10 = vmov (%p300_p0), 0  }
 0x1a0   : > { %4607 = vmatpush3.bf16.msra.mxu1 %v4899_v11 }
 0x1a1   : > { %4608 = vmatprep.subr.bf16.mxu1 %v4900_v12  ;;  %v4918_v12 = vld [vmem:[%s6968_s8 + $0xc] ss:$52 sps:$4 sm:$0xff] (%p300_p0)  }
 0x1a4   : > { %4609 = vmatpush3.bf16.msra.mxu1 %v4901_v13 }
 0x1a5   : > { %4610 = vmatprep.subr.bf16.mxu1 %v4902_v14  ;;  %v4916_v14 = vld [vmem:[%s6968_s8 + $0x8] ss:$52 sps:$4 sm:$0xff] (%p300_p0)  }
 0x1a8   : > { %4611 = vmatpush3.bf16.msra.mxu1 %v4903_v15  ;;  %v4921_v15 = vld [vmem:[%s6968_s8 + $0x74] ss:$52 sps:$4 sm:$0xff] (%p300_p0)  }
 0x1e0   : > { %v597_v28 = vpop.f32.mrb[0].mxu1 }
 0x1e1   : > { %v4777_v29 = vpop.f32.mrb[1].mxu1 }
 0x1e2   : > { %v600_v30 = vpop.f32.mrb[2].mxu1 }
 0x1e3   : > { %v4778_v31 = vpop.f32.mrb[3].mxu1 }
 0x25c   : > { %v4587_v32 = vpop.f32.mrb[0].mxu0 }
 0x25d   : > { %v4588_v33 = vpop.f32.mrb[1].mxu0 }
 0x25e   : > { %v4589_v35 = vadd.f32 %v4588_v33, %v4587_v32  ;;  %v4590_v36 = vpop.f32.mrb[2].mxu0 }
 0x25f   : > { %v4591_v37 = vpop.f32.mrb[3].mxu0 }
 0x260   : > { %v558_v39 = vadd.f32 %v4589_v35, %v4163_v34 }
 0x262   : > { %v5690_v40 = vadd.f32 %v597_v28, %v558_v39 }
 0x264   : > { %v4183_v41 = vmul.f32 -1.442695, %v5690_v40  ;;  %v916_v21 = vand.u32 2147483647, %v5690_v40 }
 0x266   : > { %4904 = vpow2.f32 %v4183_v41  ;;  %v4205_v24 = vadd.f32 -0.9, %v916_v21  ;;  %v4938_v21 = vld [vmem:[%s6968_s8 + $0x18] ss:$52 sps:$4 sm:$0xff] (%p300_p0)  }
 0x268   : > { %v918_v27 = vmax.f32 %v4205_v24, 0.0  ;;  %v4927_v24 = vld [vmem:[%s6968_s8 + $0x7c] ss:$52 sps:$4 sm:$0xff] (%p300_p0)  }
 0x270   : > { %v4905_v42 = vpop.eup %4904 }
 0x271   : > { %v606_v43 = vadd.f32 1.0, %v4905_v42 }
 0x273   : > { %4906 = vrcp.f32 %v606_v43 }
 0x27d   : > { %v4907_v44 = vpop.eup %4906 }
 0x27e   : > { %v609_v45 = vmul.f32 1.2, %v4907_v44 }
 0x280   : > { %v4184_v46 = vadd.f32 -0.1, %v609_v45 }
 0x282   : > { %v611_v47 = vmax.f32 %v4184_v46, 0.0 }
 0x284   : > { %v5693_v49 = vmin.f32 %v611_v47, 1.0 }
 0x286   : > { %v616_v50 = vmul.f32 %v614_v48, %v5693_v49  ;;  %v931_v3 = vsub.f32 1.0, %v5693_v49 }
 0x288   : > { %v628_v51 = vrot.slane %v616_v50, 7  ;;  %v623_v52 = vrot.slane %v616_v50, 6  ;;  %v618_v55 = vrot.slane %v616_v50, 5  ;;  %v633_v56 = vrot.slane %v616_v50, 1 }
 0x289   : > { %v636_v59 = vrot.slane %v616_v50, 2  ;;  %v639_v0 = vrot.slane %v616_v50, 3 }
 0x28a   : > { %629 = vrot.lane.b32.xlu0 %v628_v51, %s5422_s17  ;;  %624 = vrot.lane.b32.xlu1 %v623_v52, %s5422_s17  ;;  %v635_v58 = vsel %vm320_vm3, %v633_v56, 0.0  ;;  %v4185_v51 = vld [vmem:[%s6967_s7] ss:$0 sm:$0xff] }
 0x28b   : > { %v638_v63 = vsel %vm324_vm6, %v636_v59, 0.0  ;;  %v641_v5 = vsel %vm328_vm8, %v639_v0, 0.0 }
 0x28e   : > { %653 = vrot.lane.b32.xlu0 %v616_v50, %s5422_s17  ;;  %619 = vrot.lane.b32.xlu1 %v618_v55, %s5422_s17 }
 0x292   : > { %657 = vrot.lane.b32.xlu0 %v635_v58, %s5419_s23 }
 0x296   : > { %661 = vrot.lane.b32.xlu0 %v638_v63, %s5418_s22 }
 0x29a   : > { %665 = vrot.lane.b32.xlu0 %v641_v5, %s5422_s17  ;;  %v930_v5 = vmul.f32 %v5693_v49, %v5578_v38  ;;  %v4913_v38 = vld [vmem:[%s6968_s8 + $0x6c] ss:$52 sps:$4 sm:$0xff] (%p300_p0)   ;;  %v4915_v49 = vld [vmem:[%s6968_s8 + $0x68] ss:$52 sps:$4 sm:$0xff] (%p300_p0)  }
 0x2fc   : > { %v630_v18 = vpop.permute.xlu0 %629  ;;  %v625_v19 = vpop.permute.xlu1 %624 }
 0x2fd   : > { %v627_v20 = vsel %vm312_vm5, 0.0, %v625_v19  ;;  %v632_v23 = vsel %vm316_vm4, 0.0, %v630_v18  ;;  %v4919_v18 = vld [vmem:[%s6968_s8 + $0x70] ss:$52 sps:$4 sm:$0xff] (%p300_p0)   ;;  %v4924_v19 = vld [vmem:[%s6968_s8 + $0x14] ss:$52 sps:$4 sm:$0xff] (%p300_p0)  }
 0x2fe   : > { %643 = vrot.lane.b32.xlu1 %v627_v20, %s5419_s23  ;;  %v4936_v20 = vld [vmem:[%s6968_s8 + $0x1c] ss:$52 sps:$4 sm:$0xff] (%p300_p0)  }
 0x2ff   :  { %1310 = vmatprep.subr.bf16.mxu1 (%p300_p0), %v4936_v20  ;;  %v5005_v20 = vld [vmem:[%s6970_s10 + $0xf0] ss:$12 sps:$4 sm:$0xff] (%p300_p0)  }
 0x300   : > { %v654_v22 = vpop.permute.xlu0 %653  ;;  %v620_v36 = vpop.permute.xlu1 %619 }
 0x301   : > { %v671_v26 = vsel %vm295_vm2, %v654_v22, %v635_v58  ;;  %v622_v40 = vsel %vm308_vm9, 0.0, %v620_v36  ;;  %v4922_v22 = vld [vmem:[%s6968_s8 + $0x10] ss:$52 sps:$4 sm:$0xff] (%p300_p0)   ;;  %v4954_v36 = vld [vmem:[%s6970_s10 + $0x180] ss:$12 sps:$4 sm:$0xff] (%p300_p0)  }
 0x302   : > { %647 = vrot.lane.b32.xlu1 %v632_v23, %s5418_s22 }
 0x304   : > { %v658_v25 = vpop.permute.xlu0 %657 }
 0x305   : > { %v672_v28 = vsel %vm353_vm10, %v671_v26, %v658_v25  ;;  %v4941_v25 = vld [vmem:[%s6968_s8 + $0x80] ss:$52 sps:$4 sm:$0xff] (%p300_p0)  }
 0x306   : > { %650 = vrot.lane.b32.xlu1 %v632_v23, %s5422_s17  ;;  %v4939_v23 = vld [vmem:[%s6968_s8 + $0x84] ss:$52 sps:$4 sm:$0xff] (%p300_p0)   ;;  %v4944_v26 = vld [vmem:[%s6968_s8 + $0x2c] ss:$52 sps:$4 sm:$0xff] (%p300_p0)  }
 0x308   : > { %v662_v29 = vpop.permute.xlu0 %661 }
 0x309   : > { %v673_v30 = vsel %vm355_vm11, %v672_v28, %v662_v29  ;;  %v4930_v28 = vld [vmem:[%s6968_s8 + $0x24] ss:$52 sps:$4 sm:$0xff] (%p300_p0)   ;;  %v4942_v29 = vld [vmem:[%s6968_s8 + $0x28] ss:$52 sps:$4 sm:$0xff] (%p300_p0)  }
 0x30a   : > { %v675_v31 = vmul.f32 %v673_v30, %v5677_v17  ;;  %920 = vrot.lane.b32.xlu1 %v918_v27, %s5422_s17  ;;  %v4950_v30 = vld [vmem:[%s6968_s8 + $0x94] ss:$52 sps:$4 sm:$0xff] (%p300_p0)  }
 0x30c   : > { %v678_v32 = vpack.c.bf16 %v675_v31, %v675_v31  ;;  %v666_v33 = vpop.permute.xlu0 %665  ;;  %v4928_v31 = vld [vmem:[%s6968_s8 + $0x20] ss:$52 sps:$4 sm:$0xff] (%p300_p0)  }
 0x30d   : > { %v676_v34 = vmul.f32 %v666_v33, %v5650_v1  ;;  %v4948_v33 = vld [vmem:[%s6968_s8 + $0x90] ss:$52 sps:$4 sm:$0xff] (%p300_p0)  }
 0x30e   : > { %866 = vmatprep.mubr.bf16.mxu1 %v678_v32  ;;  %v4933_v32 = vld [vmem:[%s6968_s8 + $0x8c] ss:$52 sps:$4 sm:$0xff] (%p300_p0)  }
 0x30f   : > { %v679_v35 = vpack.c.bf16 %v676_v34, %v676_v34  ;;  %v4956_v34 = vld [vmem:[%s6970_s10 + $0x184] ss:$12 sps:$4 sm:$0xff] (%p300_p0)  }
 0x311   : > { %4784 = vmatmul.mubr.msk.bf16.vlgmr.msra.gmra.mrb[4].mxu0 %vm295_vm2, %v679_v35  ;;  %v4931_v35 = vld [vmem:[%s6968_s8 + $0x88] ss:$52 sps:$4 sm:$0xff] (%p300_p0)  }
 0x312   :  { %1219 = vmatprep.mubr.bf16.mxu0 (%p300_p0), %v5423_v10  ;;  %1188 = vmatpush1.bf16.msra.mxu0 (%p300_p0), %v4912_v9  ;;  %v5016_v9 = vld [vmem:[%s6970_s10 + $0x274] ss:$12 sps:$4 sm:$0xff] (%p300_p0)  }
 0x313   :  { %1189 = vmatprep.subr.bf16.mxu0 (%p300_p0), %v4913_v38  ;;  %v4987_v38 = vld [vmem:[%s6970_s10 + $0xa8] ss:$12 sps:$4 sm:$0xff] (%p300_p0)  }
 0x316   :  { %1190 = vmatpush1.bf16.msra.mxu0 (%p300_p0), %v4915_v49  ;;  %v4995_v49 = vld [vmem:[%s6970_s10 + $0xc4] ss:$12 sps:$4 sm:$0xff] (%p300_p0)  }
 0x317   :  { %1228 = vmatprep.subr.bf16.mxu0 (%p300_p0), %v4918_v12  ;;  %v5022_v12 = vld [vmem:[%s6970_s10 + $0x28c] ss:$12 sps:$4 sm:$0xff] (%p300_p0)  }
 0x370   : > { %v644_v37 = vpop.permute.xlu1 %643 }
 0x371   : > { %v668_v41 = vsel %vm295_vm2, %v622_v40, %v644_v37  ;;  %v4962_v37 = vld [vmem:[%s6970_s10 + $0x19c] ss:$12 sps:$4 sm:$0xff] (%p300_p0)   ;;  %v4960_v40 = vld [vmem:[%s6970_s10 + $0x198] ss:$12 sps:$4 sm:$0xff] (%p300_p0)  }
 0x374   : > { %v648_v39 = vpop.permute.xlu1 %647 }
 0x375   : > { %v669_v42 = vsel %vm353_vm10, %v668_v41, %v648_v39  ;;  %v4934_v39 = vld [vmem:[%s6968_s8 + $0x30] ss:$52 sps:$4 sm:$0xff] (%p300_p0)   ;;  %v4968_v41 = vld [vmem:[%s6970_s10 + $0x1b4] ss:$12 sps:$4 sm:$0xff] (%p300_p0)  }
 0x378   : > { %v651_v17 = vpop.permute.xlu1 %650 }
 0x379   : > { %v670_v43 = vsel %vm355_vm11, %v669_v42, %v651_v17  ;;  %v4935_v42 = vld [vmem:[%s6968_s8 + $0x98] ss:$52 sps:$4 sm:$0xff] (%p300_p0)   ;;  %v4947_v17 = vld [vmem:[%s6970_s10 + $0x4] ss:$12 sps:$4 sm:$0xff] (%p300_p0)  }
 0x37a   : > { %v674_v44 = vmul.f32 %v670_v43, %v5672_v16  ;;  %v4966_v43 = vld [vmem:[%s6970_s10 + $0x1b0] ss:$12 sps:$4 sm:$0xff] (%p300_p0)  }
 0x37c   : > { %v677_v45 = vpack.c.bf16 %v674_v44, %v674_v44  ;;  %v921_v16 = vpop.permute.xlu1 %920  ;;  %v4974_v44 = vld [vmem:[%s6970_s10 + $0x1cc] ss:$12 sps:$4 sm:$0xff] (%p300_p0)  }
 0x37d   : > { %v923_v53 = vadd.f32 %v921_v16, %v918_v27  ;;  %v4925_v27 = vld [vmem:[%s6968_s8 + $0x78] ss:$52 sps:$4 sm:$0xff] (%p300_p0)   ;;  %v4990_v16 = vld [vmem:[%s6970_s10 + $0x210] ss:$12 sps:$4 sm:$0xff] (%p300_p0)  }
 0x37e   : > { %867 = vmatmul.mubr.bf16.vlgmr.msra.gmra.mrb[4].mxu1 %v677_v45  ;;  %v4945_v45 = vld [vmem:[%s6970_s10] ss:$12 sps:$4 sm:$0xff] (%p300_p0)  }
 0x37f   :  { %1342 = vmatprep.mubr.bf16.mxu1 (%p300_p0), %v5423_v10  ;;  %1311 = vmatpush1.bf16.msra.mxu1 (%p300_p0), %v4938_v21  ;;  %v5013_v21 = vld [vmem:[%s6970_s10 + $0x10c] ss:$12 sps:$4 sm:$0xff] (%p300_p0)  }
 0x380   :  { %1312 = vmatprep.subr.bf16.mxu1 (%p300_p0), %v4939_v23  ;;  %v5019_v23 = vld [vmem:[%s6970_s10 + $0x124] ss:$12 sps:$4 sm:$0xff] (%p300_p0)  }
 0x383   :  { %1313 = vmatpush1.bf16.msra.mxu1 (%p300_p0), %v4941_v25  ;;  %v5025_v25 = vld [vmem:[%s6970_s10 + $0x13c] ss:$12 sps:$4 sm:$0xff] (%p300_p0)  }
 0x384   :  { %1392 = vmatprep.subr.bf16.mxu1 (%p300_p0), %v4944_v26  ;;  %v5023_v26 = vld [vmem:[%s6970_s10 + $0x138] ss:$12 sps:$4 sm:$0xff] (%p300_p0)  }
 0x3e4   : > { %v908_v1 = vpop.f32.mrb[4].mxu0 }
 0x3e5   : > { %v4785_v46 = vpop.f32.mrb[5].mxu0 }
 0x3e6   : > { %v911_v47 = vpop.f32.mrb[6].mxu0  ;;  %v4972_v46 = vld [vmem:[%s6970_s10 + $0x1c8] ss:$12 sps:$4 sm:$0xff] (%p300_p0)  }
 0x3e7   : > { %v4786_v48 = vpop.f32.mrb[7].mxu0  ;;  %v4980_v47 = vld [vmem:[%s6970_s10 + $0x1e4] ss:$12 sps:$4 sm:$0xff] (%p300_p0)  }
 0x3e8   :  { %v4951_v48 = vld [vmem:[%s6970_s10 + $0x18] ss:$12 sps:$4 sm:$0xff] (%p300_p0)  }
 0x451   : > { %v4612_v50 = vpop.f32.mrb[4].mxu1 }
 0x452   : > { %v4613_v52 = vpop.f32.mrb[5].mxu1 }
 0x453   : > { %v4614_v54 = vadd.f32 %v4613_v52, %v4612_v50  ;;  %v4615_v55 = vpop.f32.mrb[6].mxu1  ;;  %v4959_v50 = vld [vmem:[%s6970_s10 + $0x34] ss:$12 sps:$4 sm:$0xff] (%p300_p0)   ;;  %v4986_v52 = vld [vmem:[%s6970_s10 + $0x1fc] ss:$12 sps:$4 sm:$0xff] (%p300_p0)  }
 0x454   : > { %v4616_v56 = vpop.f32.mrb[7].mxu1  ;;  %v4965_v55 = vld [vmem:[%s6970_s10 + $0x4c] ss:$12 sps:$4 sm:$0xff] (%p300_p0)  }
 0x455   : > { %v869_v57 = vadd.f32 %v4614_v54, %v4185_v51  ;;  %v4978_v51 = vld [vmem:[%s6970_s10 + $0x1e0] ss:$12 sps:$4 sm:$0xff] (%p300_p0)   ;;  %v4957_v54 = vld [vmem:[%s6970_s10 + $0x30] ss:$12 sps:$4 sm:$0xff] (%p300_p0)   ;;  %v4984_v56 = vld [vmem:[%s6970_s10 + $0x1f8] ss:$12 sps:$4 sm:$0xff] (%p300_p0)  }
 0x457   : > { %v909_v58 = vadd.f32 %v908_v1, %v869_v57  ;;  %v4953_v1 = vld [vmem:[%s6970_s10 + $0x1c] ss:$12 sps:$4 sm:$0xff] (%p300_p0)   ;;  %v4992_v57 = vld [vmem:[%s6970_s10 + $0x214] ss:$12 sps:$4 sm:$0xff] (%p300_p0)  }
 0x459   : > { %4908 = vtanh.f32 %v909_v58  ;;  %v924_v59 = vand.u32 2147483647, %v909_v58  ;;  %v4963_v58 = vld [vmem:[%s6970_s10 + $0x48] ss:$12 sps:$4 sm:$0xff] (%p300_p0)  }
 0x45b   : > { %v4206_v60 = vadd.f32 -0.9, %v924_v59  ;;  %v4971_v59 = vld [vmem:[%s6970_s10 + $0x64] ss:$12 sps:$4 sm:$0xff] (%p300_p0)  }
 0x45d   : > { %v926_v61 = vmax.f32 %v4206_v60, 0.0  ;;  %v4969_v60 = vld [vmem:[%s6970_s10 + $0x60] ss:$12 sps:$4 sm:$0xff] (%p300_p0)  }
 0x45f   : > { %v927_v63 = vadd.f32 %v926_v61, %v923_v53  ;;  %v4998_v53 = vld [vmem:[%s6970_s10 + $0x22c] ss:$12 sps:$4 sm:$0xff] (%p300_p0)   ;;  %v4977_v61 = vld [vmem:[%s6970_s10 + $0x7c] ss:$12 sps:$4 sm:$0xff] (%p300_p0)  }
 0x461   : > { %v928_v0 = vadd.f32 %v927_v63, %v915_v62  ;;  %v4996_v62 = vld [vmem:[%s6970_s10 + $0x228] ss:$12 sps:$4 sm:$0xff] (%p300_p0)   ;;  %v5004_v63 = vld [vmem:[%s6970_s10 + $0x244] ss:$12 sps:$4 sm:$0xff] (%p300_p0)  }
 0x462   :  { %302 = sbr.rel (!%p300_p0) target bundleno = 254 (0xfe), region = 83 }
 0x463   : > { %v4909_v4 = vpop.eup %4908  ;;  %929 = vst.msk [vmem:[#allocation3] sm:$0xff] %vm295_vm2, %v928_v0  ;;  %v4975_v0 = vld [vmem:[%s6970_s10 + $0x78] ss:$12 sps:$4 sm:$0xff] (%p300_p0)  }
 0x464   : > { %v932_v6 = vmul.f32 %v4909_v4, %v931_v3  ;;  %v4983_v3 = vld [vmem:[%s6970_s10 + $0x94] ss:$12 sps:$4 sm:$0xff] (%p300_p0)  }
 0x465   :  { %v5002_v4 = vld [vmem:[%s6970_s10 + $0x240] ss:$12 sps:$4 sm:$0xff] (%p300_p0)  }
 0x466   : > { %v933_v7 = vadd.f32 %v932_v6, %v930_v5  ;;  %v5010_v5 = vld [vmem:[%s6970_s10 + $0x25c] ss:$12 sps:$4 sm:$0xff] (%p300_p0)  }
 0x467   :  { %v4981_v6 = vld [vmem:[%s6970_s10 + $0x90] ss:$12 sps:$4 sm:$0xff] (%p300_p0)  }
 0x468   : > { %934 = vst.msk [vmem:[#allocation2] sm:$0xff] %vm295_vm2, %v933_v7  ;;  %v4989_v7 = vld [vmem:[%s6970_s10 + $0xac] ss:$12 sps:$4 sm:$0xff] (%p300_p0)  }
 0x46f   :  { %v953_v11 = vld [vmem:[#allocation2] sm:$0xff] }
 0x470   :  { %v5807_v13 = vpack.c.bf16 %v953_v11, %v953_v11  ;;  %v5014_v11 = vld [vmem:[%s6970_s10 + $0x270] ss:$12 sps:$4 sm:$0xff]  }
 0x472   :  { %4233 = vmatmul.mubr.msk.bf16.vlgmr.msra.gmra.mrb[0].mxu0 %vm295_vm2, %v5807_v13  ;;  %4236 = vmatmul.mubr.msk.bf16.vlgmr.msra.gmra.mrb[0].mxu1 %vm295_vm2, %v5807_v13 }
 0x473   :  { %1229 = vmatpush1.bf16.msra.mxu0 %v4916_v14  ;;  %1260 = vmatprep.mubr.bf16.mxu0 %v5423_v10  ;;  %v5001_v14 = vld [vmem:[%s6970_s10 + $0xdc] ss:$12 sps:$4 sm:$0xff]  }
 0x474   :  { %1230 = vmatprep.subr.bf16.mxu0 %v4921_v15  ;;  %1393 = vmatpush1.bf16.msra.mxu1 %v4942_v29  ;;  %v5020_v15 = vld [vmem:[%s6970_s10 + $0x288] ss:$12 sps:$4 sm:$0xff]  }
 0x475   :  { %1394 = vmatprep.subr.bf16.mxu1 %v4950_v30  ;;  %1424 = vmatprep.mubr.bf16.mxu1 %v5423_v10  ;;  %v5031_v29 = vld [vmem:[%s6970_s10 + $0x154] ss:$12 sps:$4 sm:$0xff]   ;;  %v5029_v30 = vld [vmem:[%s6970_s10 + $0x150] ss:$12 sps:$4 sm:$0xff]  }
 0x477   :  { %1231 = vmatpush1.bf16.msra.mxu0 %v4919_v18  ;;  %v4999_v18 = vld [vmem:[%s6970_s10 + $0xd8] ss:$12 sps:$4 sm:$0xff]  }
 0x478   :  { %1269 = vmatprep.subr.bf16.mxu0 %v4924_v19  ;;  %1395 = vmatpush1.bf16.msra.mxu1 %v4948_v33  ;;  %v5007_v19 = vld [vmem:[%s6970_s10 + $0xf4] ss:$12 sps:$4 sm:$0xff]   ;;  %v5037_v33 = vld [vmem:[%s6970_s10 + $0x16c] ss:$12 sps:$4 sm:$0xff]  }
 0x479   :  { %3561 = vmatprep.subr.bf16.mxu1 %v4956_v34  ;;  %v5035_v34 = vld [vmem:[%s6970_s10 + $0x168] ss:$12 sps:$4 sm:$0xff]  }
 0x47a   :  { %4234 = vmatmul.mubr.msk.bf16.vlgmr.msra.gmra.mrb[4].mxu0 %vm295_vm2, %v5807_v13 }
 0x47b   :  { %1270 = vmatpush1.bf16.msra.mxu0 %v4922_v22  ;;  %1301 = vmatprep.mubr.bf16.mxu0 %v5423_v10  ;;  %v5011_v22 = vld [vmem:[%s6970_s10 + $0x108] ss:$12 sps:$4 sm:$0xff]  }
 0x47c   :  { %1271 = vmatprep.subr.bf16.mxu0 %v4927_v24  ;;  %4238 = vmatmul.mubr.msk.bf16.vlgmr.msra.gmra.mrb[4].mxu1 %vm295_vm2, %v5807_v13  ;;  %v5017_v24 = vld [vmem:[%s6970_s10 + $0x120] ss:$12 sps:$4 sm:$0xff]  }
 0x47d   :  { %3562 = vmatpush1.bf16.msra.mxu1 %v4954_v36  ;;  %v5038_v36 = vld [vmem:[%s6970_s10 + $0x2d0] ss:$12 sps:$4 sm:$0xff]  }
 0x47e   :  { %3563 = vmatprep.subr.bf16.mxu1 %v4962_v37  ;;  %v5043_v37 = vld [vmem:[%s6970_s10 + $0x2ec] ss:$12 sps:$4 sm:$0xff]  }
 0x47f   :  { %1272 = vmatpush1.bf16.msra.mxu0 %v4925_v27  ;;  %v5028_v27 = vld [vmem:[%s6970_s10 + $0x2a4] ss:$12 sps:$4 sm:$0xff]  }
 0x480   :  { %1351 = vmatprep.subr.bf16.mxu0 %v4930_v28  ;;  %v5026_v28 = vld [vmem:[%s6970_s10 + $0x2a0] ss:$12 sps:$4 sm:$0xff]  }
 0x481   :  { %3564 = vmatpush1.bf16.msra.mxu1 %v4960_v40  ;;  %v5046_v40 = vld [vmem:[%s6970_s10 + $0x304] ss:$12 sps:$4 sm:$0xff]  }
 0x482   :  { %4235 = vmatmul.mubr.msk.bf16.vlgmr.msra.gmra.mrb[8].mxu0 %vm295_vm2, %v5807_v13  ;;  %3565 = vmatprep.subr.bf16.mxu1 %v4968_v41  ;;  %v5052_v41 = vld [vmem:[%s6970_s10 + $0x904] ss:$12 sps:$4 sm:$0xff]  }
 0x483   :  { %1352 = vmatpush1.bf16.msra.mxu0 %v4928_v31  ;;  %1383 = vmatprep.mubr.bf16.mxu0 %v5423_v10  ;;  %v5034_v31 = vld [vmem:[%s6970_s10 + $0x2bc] ss:$12 sps:$4 sm:$0xff]  }
 0x484   :  { %1353 = vmatprep.subr.bf16.mxu0 %v4933_v32  ;;  %v5032_v32 = vld [vmem:[%s6970_s10 + $0x2b8] ss:$12 sps:$4 sm:$0xff]  }
 0x485   :  { %3566 = vmatpush1.bf16.msra.mxu1 %v4966_v43 }
 0x486   :  { %3567 = vmatprep.subr.bf16.mxu1 %v4974_v44  ;;  %v6100_v44 = vld [vmem:[%s6969_s9] sm:$0xff] }
 0x487   :  { %1354 = vmatpush1.bf16.msra.mxu0 %v4931_v35  ;;  %v5040_v35 = vld [vmem:[%s6970_s10 + $0x2d4] ss:$12 sps:$4 sm:$0xff]  }
 0x488   :  { %4787 = vmatprep.subr.bf16.mxu0 %v5416_v2 }
 0x489   :  { %3568 = vmatpush1.bf16.msra.mxu1 %v4972_v46 }
 0x48a   :  { %4237 = vmatmul.mubr.msk.bf16.vlgmr.msra.gmra.mrb[12].mxu0 %vm295_vm2, %v5807_v13  ;;  %3569 = vmatprep.subr.bf16.mxu1 %v4980_v47 }
 0x48b   :  { %4788 = vmatpush3.bf16.msra.mxu0 %v4934_v39  ;;  %4791 = vmatprep.mubr.msk.bf16.mxu0 %vm5417_vm0, %v5416_v2  ;;  %v5041_v39 = vld [vmem:[%s6970_s10 + $0x2e8] ss:$12 sps:$4 sm:$0xff]  }
 0x48c   :  { %4789 = vmatprep.subr.bf16.mxu0 %v5416_v2 }
 0x48d   :  { %3570 = vmatpush1.bf16.msra.mxu1 %v4978_v51 }
 0x48e   :  { %3571 = vmatprep.subr.bf16.mxu1 %v4986_v52 }
 0x48f   :  { %4790 = vmatpush3.bf16.msra.mxu0 %v4935_v42  ;;  %v987_v42 = vlaneseq }
 0x490   :  { %3520 = vmatprep.subr.bf16.mxu0 %v4947_v17 }
 0x491   :  { %3572 = vmatpush1.bf16.msra.mxu1 %v4984_v56  ;;  %v6092_v17 = vshrl.u32 %v987_v42, 7 }
 0x492   :  { %4792 = vmatmul.mubr.msk.bf16.vlgmr.msra.gmra.mrb[16].mxu0 %vm295_vm2, %v5807_v13  ;;  %3573 = vmatprep.subr.bf16.mxu1 %v4992_v57  ;;  %v4993_v13 = vld [vmem:[%s6970_s10 + $0xc0] ss:$12 sps:$4 sm:$0xff]  }
 0x493   :  { %3521 = vmatpush1.bf16.msra.mxu0 %v4945_v45  ;;  %v6095_v43 = vsub.s32 0, %v6092_v17  ;;  %v6103_v45 = vsub.s32 1, %v6092_v17  ;;  %v6110_v51 = vsub.s32 2, %v6092_v17 }
 0x494   :  { %3522 = vmatprep.subr.bf16.mxu0 %v4953_v1 }
 0x495   :  { %3574 = vmatpush1.bf16.msra.mxu1 %v4990_v16  ;;  %v990_v1 = vrot.slane %v6100_v44, %v6095_v43  ;;  %v994_v46 = vrot.slane %v6100_v44, %v6103_v45 }
 0x496   :  { %3575 = vmatprep.subr.bf16.mxu1 %v4998_v53  ;;  %v5050_v53 = vld [vmem:[%s6970_s10 + $0x900] ss:$12 sps:$4 sm:$0xff]  }
 0x497   :  { %3523 = vmatpush1.bf16.msra.mxu0 %v4951_v48 }
 0x498   :  { %3524 = vmatprep.subr.bf16.mxu0 %v4959_v50 }
 0x499   :  { %3576 = vmatpush1.bf16.msra.mxu1 %v4996_v62  ;;  %v5058_v62 = vld [vmem:[%s6970_s10 + $0x91c] ss:$12 sps:$4 sm:$0xff]  }
 0x49a   :  { %3577 = vmatprep.subr.bf16.mxu1 %v5004_v63 }
 0x49b   :  { %3525 = vmatpush1.bf16.msra.mxu0 %v4957_v54 }
 0x49c   :  { %3526 = vmatprep.subr.bf16.mxu0 %v4965_v55  ;;  %v1001_v55 = vsub.s32 3, %v6092_v17 }
 0x49d   :  { %3578 = vmatpush1.bf16.msra.mxu1 %v5002_v4 }
 0x49e   :  { %3579 = vmatprep.subr.bf16.mxu1 %v5010_v5 }
 0x49f   :  { %3527 = vmatpush1.bf16.msra.mxu0 %v4963_v58 }
 0x4a0   :  { %3528 = vmatprep.subr.bf16.mxu0 %v4971_v59  ;;  %v998_v59 = vrot.slane %v6100_v44, %v6110_v51 }
 0x4a1   :  { %3580 = vmatpush1.bf16.msra.mxu1 %v5008_v8 }
 0x4a2   :  { %3581 = vmatprep.subr.bf16.mxu1 %v5016_v9 }
 0x4a3   :  { %3529 = vmatpush1.bf16.msra.mxu0 %v4969_v60  ;;  %v1002_v60 = vrot.slane %v6100_v44, %v1001_v55 }
 0x4a4   :  { %3530 = vmatprep.subr.bf16.mxu0 %v4977_v61 }
 0x4a5   :  { %3582 = vmatpush1.bf16.msra.mxu1 %v5014_v11 }
 0x4a6   :  { %3583 = vmatprep.subr.bf16.mxu1 %v5022_v12 }
 0x4a7   :  { %3531 = vmatpush1.bf16.msra.mxu0 %v4975_v0 }
 0x4a8   :  { %3532 = vmatprep.subr.bf16.mxu0 %v4983_v3 }
 0x4a9   :  { %3584 = vmatpush1.bf16.msra.mxu1 %v5020_v15 }
 0x4aa   :  { %3585 = vmatprep.subr.bf16.mxu1 %v5028_v27 }
 0x4ab   :  { %3533 = vmatpush1.bf16.msra.mxu0 %v4981_v6  ;;  %v1009_v6 = vsub.s32 5, %v6092_v17 }
 0x4ac   :  { %3534 = vmatprep.subr.bf16.mxu0 %v4989_v7  ;;  %v5056_v7 = vld [vmem:[%s6970_s10 + $0x918] ss:$12 sps:$4 sm:$0xff]  }
 0x4ad   :  { %3586 = vmatpush1.bf16.msra.mxu1 %v5026_v28  ;;  %v5068_v28 = vld [vmem:[%s6970_s10 + $0x948] ss:$12 sps:$4 sm:$0xff]  }
 0x4ae   :  { %3587 = vmatprep.subr.bf16.mxu1 %v5034_v31  ;;  %v5074_v31 = vld [vmem:[%s6970_s10 + $0xc8] ss:$12 sps:$4 sm:$0xff]  }
 0x4af   :  { %3535 = vmatpush1.bf16.msra.mxu0 %v4987_v38  ;;  %v5064_v38 = vld [vmem:[%s6970_s10 + $0x934] ss:$12 sps:$4 sm:$0xff]  }
 0x4b0   :  { %3536 = vmatprep.subr.bf16.mxu0 %v4995_v49 }
 0x4b1   :  { %3588 = vmatpush1.bf16.msra.mxu1 %v5032_v32 }
 0x4b2   :  { %3589 = vmatprep.subr.bf16.mxu1 %v5040_v35  ;;  %v5061_v35 = vld [vmem:[%s6970_s10 + $0x34c] ss:$12 sps:$4 sm:$0xff]  }
 0x4b3   :  { %3537 = vmatpush1.bf16.msra.mxu0 %v4993_v13  ;;  %v5044_v13 = vld [vmem:[%s6970_s10 + $0x300] ss:$12 sps:$4 sm:$0xff]  }
 0x4b4   :  { %3538 = vmatprep.subr.bf16.mxu0 %v5001_v14  ;;  %v1010_v14 = vrot.slane %v6100_v44, %v1009_v6 }
 0x4b5   :  { %3590 = vmatpush1.bf16.msra.mxu1 %v5038_v36 }
 0x4b6   :  { %3591 = vmatprep.subr.bf16.mxu1 %v5043_v37  ;;  %v1005_v37 = vsub.s32 4, %v6092_v17 }
 0x4b7   :  { %3539 = vmatpush1.bf16.msra.mxu0 %v4999_v18 }
 0x4b8   :  { %3540 = vmatprep.subr.bf16.mxu0 %v5007_v19  ;;  %v5049_v19 = vld [vmem:[%s6970_s10 + $0x31c] ss:$12 sps:$4 sm:$0xff]  }
 0x4b9   :  { %3592 = vmatpush1.bf16.msra.mxu1 %v5041_v39 }
 0x4ba   :  { %3602 = vmatprep.subr.bf16.mxu1 %v5046_v40  ;;  %v6192_v40 = vld [vmem:[%s6969_s9 + $0x8] sm:$0x1f] }
 0x4bb   :  { %3541 = vmatpush1.bf16.msra.mxu0 %v5005_v20  ;;  %v5070_v20 = vld [vmem:[%s6970_s10 + $0x94c] ss:$12 sps:$4 sm:$0xff]  }
 0x4bc   :  { %3542 = vmatprep.subr.bf16.mxu0 %v5013_v21 }
 0x4bf   :  { %3543 = vmatpush1.bf16.msra.mxu0 %v5011_v22 }
 0x4c0   :  { %3544 = vmatprep.subr.bf16.mxu0 %v5019_v23 }
 0x4c3   :  { %3545 = vmatpush1.bf16.msra.mxu0 %v5017_v24 }
 0x4c4   :  { %3546 = vmatprep.subr.bf16.mxu0 %v5025_v25  ;;  %v5047_v25 = vld [vmem:[%s6970_s10 + $0x318] ss:$12 sps:$4 sm:$0xff]  }
 0x4c7   :  { %3547 = vmatpush1.bf16.msra.mxu0 %v5023_v26 }
 0x4c8   :  { %3548 = vmatprep.subr.bf16.mxu0 %v5031_v29  ;;  %v5055_v29 = vld [vmem:[%s6970_s10 + $0x334] ss:$12 sps:$4 sm:$0xff]  }
 0x4cb   :  { %3549 = vmatpush1.bf16.msra.mxu0 %v5029_v30 }
 0x4cc   :  { %3550 = vmatprep.subr.bf16.mxu0 %v5037_v33  ;;  %v5053_v33 = vld [vmem:[%s6970_s10 + $0x330] ss:$12 sps:$4 sm:$0xff]  }
 0x4cf   :  { %3551 = vmatpush1.bf16.msra.mxu0 %v5035_v34 }
 0x4d0   :  { %3766 = vmatprep.subr.bf16.mxu0 %v5052_v41  ;;  %v5059_v41 = vld [vmem:[%s6970_s10 + $0x348] ss:$12 sps:$4 sm:$0xff]  }
 0x545   :  { %v1221_v47 = vpop.f32.mrb[0].mxu0  ;;  %v6138_v11 = vpop.f32.mrb[0].mxu1 }
 0x546   :  { %v1222_v48 = vadd.f32 %v1221_v47, %v990_v1  ;;  %v1223_v50 = vpop.f32.mrb[1].mxu0  ;;  %v6149_v15 = vpop.f32.mrb[1].mxu1  ;;  %v1038_v47 = vrot.slane %v6192_v40, %v1005_v37 }
 0x547   :  { %v1224_v52 = vadd.f32 %v1223_v50, %v994_v46  ;;  %v1225_v54 = vpop.f32.mrb[2].mxu0  ;;  %v1348_v21 = vpop.f32.mrb[2].mxu1  ;;  %v5067_v46 = vld [vmem:[%s6970_s10 + $0x364] ss:$12 sps:$4 sm:$0xff]   ;;  %v5073_v50 = vld [vmem:[%s6970_s10 + $0x37c] ss:$12 sps:$4 sm:$0xff]  }
 0x548   :  { %v1473_v56 = vmax.f32 %v1222_v48, 0.0  ;;  %v1226_v57 = vpop.f32.mrb[3].mxu0  ;;  %v1349_v23 = vpop.f32.mrb[3].mxu1  ;;  %v5065_v48 = vld [vmem:[%s6970_s10 + $0x360] ss:$12 sps:$4 sm:$0xff]  }
 0x549   :  { %v1474_v58 = vmax.f32 %v1224_v52, 0.0  ;;  %v5071_v57 = vld [vmem:[%s6970_s10 + $0x378] ss:$12 sps:$4 sm:$0xff]   ;;  %v5094_v21 = vld [vmem:[%s6970_s10 + $0x128] ss:$12 sps:$4 sm:$0xff]  }
 0x54a   :  { %v6123_v61 = vpack.c.bf16 %v1473_v56, %v1473_v56  ;;  %v5091_v23 = vld [vmem:[%s6970_s10 + $0x3d8] ss:$12 sps:$4 sm:$0xff]  }
 0x54b   :  { %v6115_v16 = vpack.c.bf16 %v1474_v58, %v1474_v58 }
 0x54d   :  { %v1262_v63 = vpop.f32.mrb[4].mxu0  ;;  %3552 = vmatprep.mubr.bf16.mxu0 %v6115_v16 }
 0x54e   :  { %v1263_v0 = vadd.f32 %v1262_v63, %v998_v59  ;;  %v1264_v3 = vpop.f32.mrb[5].mxu0  ;;  %3553 = vmatmul.mubr.bf16.vlgmr.msra.gmra.mrb[20].mxu0 %v6123_v61 }
 0x54f   :  { %v1265_v4 = vadd.f32 %v1264_v3, %v1002_v60  ;;  %v1266_v5 = vpop.f32.mrb[6].mxu0  ;;  %3767 = vmatpush1.bf16.msra.mxu0 %v5050_v53  ;;  %3798 = vmatprep.mubr.bf16.mxu0 %v5423_v10  ;;  %v5062_v10 = vld [vmem:[%s6970_s10 + $0x930] ss:$12 sps:$4 sm:$0xff]   ;;  %v6212_v59 = vpop.f32.mrb[4].mxu1  ;;  %v5078_v53 = vld [vmem:[%s6970_s10 + $0x394] ss:$12 sps:$4 sm:$0xff]  }
 0x550   :  { %v1475_v8 = vmax.f32 %v1263_v0, 0.0  ;;  %v1267_v9 = vpop.f32.mrb[7].mxu0  ;;  %3768 = vmatprep.subr.bf16.mxu0 %v5058_v62  ;;  %v6217_v63 = vpop.f32.mrb[5].mxu1  ;;  %v5075_v0 = vld [vmem:[%s6970_s10 + $0x8] ss:$12 sps:$4 sm:$0xff]  }
 0x551   :  { %v1476_v49 = vmax.f32 %v1265_v4, 0.0  ;;  %v1430_v3 = vpop.f32.mrb[6].mxu1  ;;  %v5079_v5 = vld [vmem:[%s6970_s10 + $0xe0] ss:$12 sps:$4 sm:$0xff]  }
 0x552   :  { %v6151_v18 = vpack.c.bf16 %v1475_v8, %v1475_v8  ;;  %v1431_v6 = vpop.f32.mrb[7].mxu1  ;;  %v5083_v8 = vld [vmem:[%s6970_s10 + $0x3ac] ss:$12 sps:$4 sm:$0xff]  }
 0x553   :  { %v6140_v12 = vpack.c.bf16 %v1476_v49, %v1476_v49  ;;  %3769 = vmatpush1.bf16.msra.mxu0 %v5056_v7  ;;  %v5076_v7 = vld [vmem:[%s6970_s10 + $0x390] ss:$12 sps:$4 sm:$0xff]   ;;  %v5080_v9 = vld [vmem:[%s6970_s10 + $0x20] ss:$12 sps:$4 sm:$0xff]   ;;  %v5081_v49 = vld [vmem:[%s6970_s10 + $0x3a8] ss:$12 sps:$4 sm:$0xff]  }
 0x554   :  { %3770 = vmatprep.subr.bf16.mxu0 %v5064_v38  ;;  %v5084_v38 = vld [vmem:[%s6970_s10 + $0xf8] ss:$12 sps:$4 sm:$0xff]   ;;  %v5126_v6 = vld [vmem:[%s6970_s10 + $0x480] ss:$12 sps:$4 sm:$0xff]  }
 0x555   :  { %3593 = vmatprep.mubr.bf16.mxu1 %v6140_v12  ;;  %v6160_v22 = vpop.f32.mrb[8].mxu0  ;;  %v5125_v3 = vld [vmem:[%s6970_s10 + $0x1b8] ss:$12 sps:$4 sm:$0xff]  }
 0x556   :  { %3594 = vmatmul.mubr.bf16.vlgmr.msra.gmra.mrb[8].mxu1 %v6151_v18  ;;  %v1305_v24 = vpop.f32.mrb[9].mxu0 }
 0x557   :  { %3603 = vmatpush1.bf16.msra.mxu1 %v5044_v13  ;;  %v1306_v26 = vadd.f32 %v1305_v24, %v1010_v14  ;;  %v1307_v27 = vpop.f32.mrb[10].mxu0  ;;  %3771 = vmatpush1.bf16.msra.mxu0 %v5062_v10  ;;  %v5088_v13 = vld [vmem:[%s6970_s10 + $0x3c4] ss:$12 sps:$4 sm:$0xff]   ;;  %v5086_v10 = vld [vmem:[%s6970_s10 + $0x3c0] ss:$12 sps:$4 sm:$0xff]  }
 0x558   :  { %3604 = vmatprep.subr.bf16.mxu1 %v5049_v19  ;;  %v1308_v30 = vpop.f32.mrb[11].mxu0  ;;  %3772 = vmatprep.subr.bf16.mxu0 %v5070_v20  ;;  %v5089_v14 = vld [vmem:[%s6970_s10 + $0x110] ss:$12 sps:$4 sm:$0xff]   ;;  %v5098_v24 = vld [vmem:[%s6970_s10 + $0x3f4] ss:$12 sps:$4 sm:$0xff]  }
 0x559   :  { %v1478_v32 = vmax.f32 %v1306_v26, 0.0  ;;  %v5093_v19 = vld [vmem:[%s6970_s10 + $0x3dc] ss:$12 sps:$4 sm:$0xff]   ;;  %v5099_v26 = vld [vmem:[%s6970_s10 + $0x140] ss:$12 sps:$4 sm:$0xff]  }
 0x55a   :  { %v5090_v20 = vld [vmem:[%s6970_s10 + $0x50] ss:$12 sps:$4 sm:$0xff]   ;;  %v5104_v30 = vld [vmem:[%s6970_s10 + $0x158] ss:$12 sps:$4 sm:$0xff]  }
 0x55b   :  { %3605 = vmatpush1.bf16.msra.mxu1 %v5047_v25  ;;  %v6178_v34 = vpack.c.bf16 %v1478_v32, %v1478_v32  ;;  %3773 = vmatpush1.bf16.msra.mxu0 %v5068_v28  ;;  %v5095_v25 = vld [vmem:[%s6970_s10 + $0x68] ss:$12 sps:$4 sm:$0xff]   ;;  %v5096_v27 = vld [vmem:[%s6970_s10 + $0x3f0] ss:$12 sps:$4 sm:$0xff]   ;;  %v5103_v28 = vld [vmem:[%s6970_s10 + $0x40c] ss:$12 sps:$4 sm:$0xff]  }
 0x55c   :  { %3606 = vmatprep.subr.bf16.mxu1 %v5055_v29  ;;  %4624 = vmatprep.subr.bf16.mxu0 %v5074_v31  ;;  %v5100_v29 = vld [vmem:[%s6970_s10 + $0x80] ss:$12 sps:$4 sm:$0xff]   ;;  %v5101_v31 = vld [vmem:[%s6970_s10 + $0x408] ss:$12 sps:$4 sm:$0xff]   ;;  %v5108_v32 = vld [vmem:[%s6970_s10 + $0x424] ss:$12 sps:$4 sm:$0xff]  }
 0x55d   :  { %v6183_v36 = vpop.f32.mrb[12].mxu0  ;;  %3634 = vmatprep.mubr.bf16.mxu1 %v6178_v34 }
 0x55e   :  { %v6187_v39 = vpop.f32.mrb[13].mxu0 }
 0x55f   :  { %3607 = vmatpush1.bf16.msra.mxu1 %v5053_v33  ;;  %v1389_v42 = vpop.f32.mrb[14].mxu0  ;;  %v5105_v33 = vld [vmem:[%s6970_s10 + $0x98] ss:$12 sps:$4 sm:$0xff]  }
 0x560   :  { %3608 = vmatprep.subr.bf16.mxu1 %v5061_v35  ;;  %v1390_v1 = vpop.f32.mrb[15].mxu0  ;;  %v5109_v35 = vld [vmem:[%s6970_s10 + $0x170] ss:$12 sps:$4 sm:$0xff]   ;;  %v1017_v42 = vsub.s32 7, %v6092_v17 }
 0x561   :  { %v5113_v1 = vld [vmem:[%s6970_s10 + $0x43c] ss:$12 sps:$4 sm:$0xff]  }
 0x563   :  { %3609 = vmatpush1.bf16.msra.mxu1 %v5059_v41  ;;  %v5106_v41 = vld [vmem:[%s6970_s10 + $0x420] ss:$12 sps:$4 sm:$0xff]  }
 0x564   :  { %3610 = vmatprep.subr.bf16.mxu1 %v5067_v46  ;;  %v5110_v46 = vld [vmem:[%s6970_s10 + $0xb0] ss:$12 sps:$4 sm:$0xff]  }
 0x565   :  { %v1467_v52 = vpop.f32.mrb[16].mxu0 }
 0x566   :  { %v1468_v54 = vadd.f32 %v1467_v52, %v1038_v47  ;;  %v4793_v56 = vpop.f32.mrb[17].mxu0  ;;  %v5114_v47 = vld [vmem:[%s6970_s10 + $0x248] ss:$12 sps:$4 sm:$0xff]   ;;  %v1006_v52 = vrot.slane %v6100_v44, %v1005_v37  ;;  %v5116_v37 = vld [vmem:[%s6970_s10 + $0x450] ss:$12 sps:$4 sm:$0xff]  }
 0x567   :  { %3611 = vmatpush1.bf16.msra.mxu1 %v5065_v48  ;;  %v1470_v58 = vpop.f32.mrb[18].mxu0  ;;  %v5111_v48 = vld [vmem:[%s6970_s10 + $0x438] ss:$12 sps:$4 sm:$0xff]   ;;  %v5115_v56 = vld [vmem:[%s6970_s10 + $0x188] ss:$12 sps:$4 sm:$0xff]  }
 0x568   :  { %v1485_v60 = vmax.f32 %v1468_v54, 0.0  ;;  %3612 = vmatprep.subr.bf16.mxu1 %v5073_v50  ;;  %v4794_v62 = vpop.f32.mrb[19].mxu0  ;;  %v1018_v50 = vrot.slane %v6100_v44, %v1017_v42  ;;  %v5118_v54 = vld [vmem:[%s6970_s10 + $0x454] ss:$12 sps:$4 sm:$0xff]   ;;  %v5156_v42 = vld [vmem:[%s6970_s10 + $0x510] ss:$12 sps:$4 sm:$0xff]  }
 0x569   :  { %v5120_v62 = vld [vmem:[%s6970_s10 + $0x1a0] ss:$12 sps:$4 sm:$0xff]  }
 0x56a   :  { %v6222_v4 = vpack.c.bf16 %v1485_v60, %v1485_v60  ;;  %v1347_v58 = vadd.f32 %v6149_v15, %v1018_v50  ;;  %v1304_v60 = vadd.f32 %v6160_v22, %v1006_v52  ;;  %v5124_v15 = vld [vmem:[%s6970_s10 + $0x278] ss:$12 sps:$4 sm:$0xff]   ;;  %v5169_v50 = vld [vmem:[%s6970_s10 + $0x410] ss:$12 sps:$4 sm:$0xff]   ;;  %v5166_v52 = vld [vmem:[%s6970_s10 + $0x540] ss:$12 sps:$4 sm:$0xff]  }
 0x56b   :  { %3613 = vmatpush1.bf16.msra.mxu1 %v5071_v57  ;;  %v5119_v57 = vld [vmem:[%s6970_s10 + $0x260] ss:$12 sps:$4 sm:$0xff]  }
 0x56c   :  { %4540 = vmatmul.mubr.msk.bf16.vlgmr.msra.gmra.mrb[24].mxu0 %vm353_vm10, %v6222_v4  ;;  %3614 = vmatprep.subr.bf16.mxu1 %v5078_v53  ;;  %v5123_v53 = vld [vmem:[%s6970_s10 + $0x46c] ss:$12 sps:$4 sm:$0xff]   ;;  %v1480_v22 = vmax.f32 %v1347_v58, 0.0  ;;  %v5178_v58 = vld [vmem:[%s6970_s10 + $0x574] ss:$12 sps:$4 sm:$0xff]  }
 0x56d   :  { %4625 = vmatpush3.bf16.msra.mxu0 %v5075_v0  ;;  %3839 = vmatprep.mubr.bf16.mxu0 %v6115_v16  ;;  %v5085_v16 = vld [vmem:[%s6970_s10 + $0x38] ss:$12 sps:$4 sm:$0xff]   ;;  %v1477_v0 = vmax.f32 %v1304_v60, 0.0  ;;  %v5175_v60 = vld [vmem:[%s6970_s10 + $0x368] ss:$12 sps:$4 sm:$0xff]  }
 0x56e   :  { %4626 = vmatprep.subr.bf16.mxu0 %v5079_v5  ;;  %v5129_v5 = vld [vmem:[%s6970_s10 + $0x290] ss:$12 sps:$4 sm:$0xff]  }
 0x56f   :  { %3615 = vmatpush1.bf16.msra.mxu1 %v5076_v7  ;;  %v6362_v7 = vpack.c.bf16 %v1480_v22, %v1480_v22  ;;  %v5184_v22 = vld [vmem:[%s6970_s10 + $0x458] ss:$12 sps:$4 sm:$0xff]  }
 0x570   :  { %3616 = vmatprep.subr.bf16.mxu1 %v5083_v8  ;;  %v6364_v8 = vpack.c.bf16 %v1477_v0, %v1477_v0  ;;  %v5181_v0 = vld [vmem:[%s6970_s10 + $0x588] ss:$12 sps:$4 sm:$0xff]  }
 0x571   :  { %4627 = vmatpush3.bf16.msra.mxu0 %v5080_v9  ;;  %v5133_v9 = vld [vmem:[%s6970_s10 + $0x49c] ss:$12 sps:$4 sm:$0xff]  }
 0x572   :  { %4628 = vmatprep.subr.bf16.mxu0 %v5084_v38  ;;  %v5130_v38 = vld [vmem:[%s6970_s10 + $0x1d0] ss:$12 sps:$4 sm:$0xff]  }
 0x573   :  { %3617 = vmatpush1.bf16.msra.mxu1 %v5081_v49  ;;  %v5134_v49 = vld [vmem:[%s6970_s10 + $0x2a8] ss:$12 sps:$4 sm:$0xff]  }
 0x574   :  { %3618 = vmatprep.subr.bf16.mxu1 %v5088_v13  ;;  %v5131_v13 = vld [vmem:[%s6970_s10 + $0x498] ss:$12 sps:$4 sm:$0xff]  }
 0x575   :  { %4629 = vmatpush3.bf16.msra.mxu0 %v5085_v16  ;;  %v5138_v16 = vld [vmem:[%s6970_s10 + $0x4b4] ss:$12 sps:$4 sm:$0xff]  }
 0x576   :  { %4630 = vmatprep.subr.bf16.mxu0 %v5089_v14  ;;  %v5135_v14 = vld [vmem:[%s6970_s10 + $0x1e8] ss:$12 sps:$4 sm:$0xff]  }
 0x577   :  { %3619 = vmatpush1.bf16.msra.mxu1 %v5086_v10  ;;  %v5139_v10 = vld [vmem:[%s6970_s10 + $0x2c0] ss:$12 sps:$4 sm:$0xff]  }
 0x578   :  { %3620 = vmatprep.subr.bf16.mxu1 %v5093_v19  ;;  %v5136_v19 = vld [vmem:[%s6970_s10 + $0x4b0] ss:$12 sps:$4 sm:$0xff]  }
 0x579   :  { %4631 = vmatpush3.bf16.msra.mxu0 %v5090_v20  ;;  %v5143_v20 = vld [vmem:[%s6970_s10 + $0x4cc] ss:$12 sps:$4 sm:$0xff]  }
 0x57a   :  { %4632 = vmatprep.subr.bf16.mxu0 %v5094_v21  ;;  %v5140_v21 = vld [vmem:[%s6970_s10 + $0x200] ss:$12 sps:$4 sm:$0xff]  }
 0x57b   :  { %3621 = vmatpush1.bf16.msra.mxu1 %v5091_v23  ;;  %v5144_v23 = vld [vmem:[%s6970_s10 + $0x2d8] ss:$12 sps:$4 sm:$0xff]  }
 0x57c   :  { %3622 = vmatprep.subr.bf16.mxu1 %v5098_v24  ;;  %v5141_v24 = vld [vmem:[%s6970_s10 + $0x4c8] ss:$12 sps:$4 sm:$0xff]  }
 0x57d   :  { %4633 = vmatpush3.bf16.msra.mxu0 %v5095_v25  ;;  %v5148_v25 = vld [vmem:[%s6970_s10 + $0x4e4] ss:$12 sps:$4 sm:$0xff]  }
 0x57e   :  { %4634 = vmatprep.subr.bf16.mxu0 %v5099_v26  ;;  %v5145_v26 = vld [vmem:[%s6970_s10 + $0x218] ss:$12 sps:$4 sm:$0xff]  }
 0x57f   :  { %3623 = vmatpush1.bf16.msra.mxu1 %v5096_v27  ;;  %v5149_v27 = vld [vmem:[%s6970_s10 + $0x2f0] ss:$12 sps:$4 sm:$0xff]  }
 0x580   :  { %3624 = vmatprep.subr.bf16.mxu1 %v5103_v28  ;;  %v5146_v28 = vld [vmem:[%s6970_s10 + $0x4e0] ss:$12 sps:$4 sm:$0xff]  }
 0x581   :  { %4635 = vmatpush3.bf16.msra.mxu0 %v5100_v29  ;;  %v5153_v29 = vld [vmem:[%s6970_s10 + $0x4fc] ss:$12 sps:$4 sm:$0xff]  }
 0x582   :  { %4636 = vmatprep.subr.bf16.mxu0 %v5104_v30  ;;  %v5150_v30 = vld [vmem:[%s6970_s10 + $0x230] ss:$12 sps:$4 sm:$0xff]  }
 0x583   :  { %3625 = vmatpush1.bf16.msra.mxu1 %v5101_v31  ;;  %v5154_v31 = vld [vmem:[%s6970_s10 + $0x3c8] ss:$12 sps:$4 sm:$0xff]  }
 0x584   :  { %3626 = vmatprep.subr.bf16.mxu1 %v5108_v32  ;;  %v5151_v32 = vld [vmem:[%s6970_s10 + $0x4f8] ss:$12 sps:$4 sm:$0xff]  }
 0x585   :  { %4637 = vmatpush3.bf16.msra.mxu0 %v5105_v33  ;;  %v5158_v33 = vld [vmem:[%s6970_s10 + $0x514] ss:$12 sps:$4 sm:$0xff]  }
 0x586   :  { %4638 = vmatprep.subr.bf16.mxu0 %v5109_v35  ;;  %v5155_v35 = vld [vmem:[%s6970_s10 + $0x308] ss:$12 sps:$4 sm:$0xff]  }
 0x587   :  { %3627 = vmatpush1.bf16.msra.mxu1 %v5106_v41  ;;  %v5159_v41 = vld [vmem:[%s6970_s10 + $0x3e0] ss:$12 sps:$4 sm:$0xff]  }
 0x588   :  { %3628 = vmatprep.subr.bf16.mxu1 %v5113_v1  ;;  %v5163_v1 = vld [vmem:[%s6970_s10 + $0x52c] ss:$12 sps:$4 sm:$0xff]  }
 0x589   :  { %4639 = vmatpush3.bf16.msra.mxu0 %v5110_v46  ;;  %v5160_v46 = vld [vmem:[%s6970_s10 + $0x320] ss:$12 sps:$4 sm:$0xff]  }
 0x58a   :  { %4646 = vmatprep.subr.bf16.mxu0 %v5114_v47  ;;  %v5164_v47 = vld [vmem:[%s6970_s10 + $0x3f8] ss:$12 sps:$4 sm:$0xff]  }
 0x58b   :  { %3629 = vmatpush1.bf16.msra.mxu1 %v5111_v48  ;;  %v5168_v48 = vld [vmem:[%s6970_s10 + $0x544] ss:$12 sps:$4 sm:$0xff]  }
 0x58c   :  { %3840 = vmatmul.mubr.bf16.vlgmr.msra.gmra.mrb[28].mxu0 %v6123_v61  ;;  %3630 = vmatprep.subr.bf16.mxu1 %v5118_v54  ;;  %v5121_v61 = vld [vmem:[%s6970_s10 + $0x468] ss:$12 sps:$4 sm:$0xff]  }
 0x58d   :  { %4647 = vmatpush3.bf16.msra.mxu0 %v5115_v56  ;;  %3879 = vmatprep.mubr.bf16.mxu0 %v6140_v12  ;;  %v5128_v12 = vld [vmem:[%s6970_s10 + $0x484] ss:$12 sps:$4 sm:$0xff]   ;;  %v5173_v54 = vld [vmem:[%s6970_s10 + $0x55c] ss:$12 sps:$4 sm:$0xff]  }
 0x58e   :  { %4648 = vmatprep.subr.bf16.mxu0 %v5119_v57  ;;  %v5170_v56 = vld [vmem:[%s6970_s10 + $0x350] ss:$12 sps:$4 sm:$0xff]   ;;  %v5174_v57 = vld [vmem:[%s6970_s10 + $0x428] ss:$12 sps:$4 sm:$0xff]  }
 0x58f   :  { %3631 = vmatpush1.bf16.msra.mxu1 %v5116_v37  ;;  %v5171_v37 = vld [vmem:[%s6970_s10 + $0x558] ss:$12 sps:$4 sm:$0xff]  }
 0x590   :  { %3632 = vmatprep.subr.bf16.mxu1 %v5123_v53  ;;  %v5179_v53 = vld [vmem:[%s6970_s10 + $0x440] ss:$12 sps:$4 sm:$0xff]  }
 0x591   :  { %4649 = vmatpush3.bf16.msra.mxu0 %v5120_v62  ;;  %v5176_v62 = vld [vmem:[%s6970_s10 + $0x570] ss:$12 sps:$4 sm:$0xff]  }
 0x592   :  { %4650 = vmatprep.subr.bf16.mxu0 %v5124_v15  ;;  %v5183_v15 = vld [vmem:[%s6970_s10 + $0x58c] ss:$12 sps:$4 sm:$0xff]  }
 0x593   :  { %3633 = vmatpush1.bf16.msra.mxu1 %v5121_v61  ;;  %v5180_v61 = vld [vmem:[%s6970_s10 + $0x380] ss:$12 sps:$4 sm:$0xff]  }
 0x594   :  { %3643 = vmatprep.subr.bf16.mxu1 %v5128_v12  ;;  %v5188_v12 = vld [vmem:[%s6970_s10 + $0x5a4] ss:$12 sps:$4 sm:$0xff]  }
 0x595   :  { %4651 = vmatpush3.bf16.msra.mxu0 %v5125_v3  ;;  %v5185_v3 = vld [vmem:[%s6970_s10 + $0x398] ss:$12 sps:$4 sm:$0xff]  }
 0x596   :  { %3635 = vmatmul.mubr.bf16.vlgmr.msra.gmra.mrb[8].mxu1 %v6364_v8  ;;  %4652 = vmatprep.subr.bf16.mxu0 %v5129_v5  ;;  %v5189_v5 = vld [vmem:[%s6970_s10 + $0x470] ss:$12 sps:$4 sm:$0xff]  }
 0x597   :  { %3644 = vmatpush1.bf16.msra.mxu1 %v5126_v6  ;;  %3675 = vmatprep.mubr.bf16.mxu1 %v6362_v7  ;;  %v1013_v6 = vsub.s32 6, %v6092_v17  ;;  %v5269_v17 = vld [vmem:[%s6970_s10 + $0x770] ss:$12 sps:$4 sm:$0xff]  }
 0x598   :  { %3645 = vmatprep.subr.bf16.mxu1 %v5133_v9  ;;  %v5186_v9 = vld [vmem:[%s6970_s10 + $0x5a0] ss:$12 sps:$4 sm:$0xff]  }
 0x599   :  { %4653 = vmatpush3.bf16.msra.mxu0 %v5130_v38  ;;  %v5193_v38 = vld [vmem:[%s6970_s10 + $0x5bc] ss:$12 sps:$4 sm:$0xff]  }
 0x59a   :  { %4654 = vmatprep.subr.bf16.mxu0 %v5134_v49  ;;  %v5190_v49 = vld [vmem:[%s6970_s10 + $0x3b0] ss:$12 sps:$4 sm:$0xff]  }
 0x59b   :  { %3646 = vmatpush1.bf16.msra.mxu1 %v5131_v13  ;;  %v1014_v13 = vrot.slane %v6100_v44, %v1013_v6  ;;  %v5195_v44 = vld [vmem:[%s6970_s10 + $0x488] ss:$12 sps:$4 sm:$0xff]   ;;  %v5236_v6 = vld [vmem:[%s6970_s10 + $0x690] ss:$12 sps:$4 sm:$0xff]  }
 0x59c   :  { %3647 = vmatprep.subr.bf16.mxu1 %v5138_v16  ;;  %v5194_v16 = vld [vmem:[%s6970_s10 + $0x548] ss:$12 sps:$4 sm:$0xff]  }
 0x59d   :  { %4655 = vmatpush3.bf16.msra.mxu0 %v5135_v14  ;;  %v5191_v14 = vld [vmem:[%s6970_s10 + $0x5b8] ss:$12 sps:$4 sm:$0xff]  }
 0x59e   :  { %4656 = vmatprep.subr.bf16.mxu0 %v5139_v10  ;;  %v5198_v10 = vld [vmem:[%s6970_s10 + $0x5d4] ss:$12 sps:$4 sm:$0xff]  }
 0x59f   :  { %3648 = vmatpush1.bf16.msra.mxu1 %v5136_v19  ;;  %v1026_v19 = vrot.slane %v6192_v40, %v6103_v45 }
 0x5a0   :  { %3649 = vmatprep.subr.bf16.mxu1 %v5143_v20  ;;  %v1345_v20 = vadd.f32 %v6138_v11, %v1014_v13  ;;  %v5200_v11 = vld [vmem:[%s6970_s10 + $0x4a0] ss:$12 sps:$4 sm:$0xff]   ;;  %v5241_v13 = vld [vmem:[%s6970_s10 + $0x6a8] ss:$12 sps:$4 sm:$0xff]  }
 0x5a1   :  { %4657 = vmatpush3.bf16.msra.mxu0 %v5140_v21  ;;  %v5199_v21 = vld [vmem:[%s6970_s10 + $0x560] ss:$12 sps:$4 sm:$0xff]  }
 0x5a2   :  { %4658 = vmatprep.subr.bf16.mxu0 %v5144_v23  ;;  %v5196_v23 = vld [vmem:[%s6970_s10 + $0x5d0] ss:$12 sps:$4 sm:$0xff]  }
 0x5a3   :  { %3650 = vmatpush1.bf16.msra.mxu1 %v5141_v24  ;;  %v5203_v24 = vld [vmem:[%s6970_s10 + $0x5ec] ss:$12 sps:$4 sm:$0xff]  }
 0x5a4   :  { %3651 = vmatprep.subr.bf16.mxu1 %v5148_v25  ;;  %v1388_v25 = vadd.f32 %v6187_v39, %v1026_v19  ;;  %v5208_v39 = vld [vmem:[%s6970_s10 + $0x604] ss:$12 sps:$4 sm:$0xff]   ;;  %v5246_v19 = vld [vmem:[%s6970_s10 + $0x6c0] ss:$12 sps:$4 sm:$0xff]  }
 0x5a5   :  { %4659 = vmatpush3.bf16.msra.mxu0 %v5145_v26  ;;  %v1479_v26 = vmax.f32 %v1345_v20, 0.0  ;;  %v5250_v20 = vld [vmem:[%s6970_s10 + $0x650] ss:$12 sps:$4 sm:$0xff]  }
 0x5a6   :  { %4660 = vmatprep.subr.bf16.mxu0 %v5149_v27  ;;  %v5201_v27 = vld [vmem:[%s6970_s10 + $0x5e8] ss:$12 sps:$4 sm:$0xff]  }
 0x5a7   :  { %3652 = vmatpush1.bf16.msra.mxu1 %v5146_v28  ;;  %v1482_v28 = vmax.f32 %v1388_v25, 0.0  ;;  %v5255_v25 = vld [vmem:[%s6970_s10 + $0x668] ss:$12 sps:$4 sm:$0xff]  }
 0x5a8   :  { %3653 = vmatprep.subr.bf16.mxu1 %v5153_v29  ;;  %v1492_v29 = vpack.c.bf16 %v1479_v26, %v1479_v26  ;;  %v5256_v26 = vld [vmem:[%s6970_s10 + $0x6f0] ss:$12 sps:$4 sm:$0xff]  }
 0x5a9   :  { %4661 = vmatpush3.bf16.msra.mxu0 %v5150_v30  ;;  %v5209_v30 = vld [vmem:[%s6970_s10 + $0x590] ss:$12 sps:$4 sm:$0xff]  }
 0x5aa   :  { %4668 = vmatprep.subr.bf16.mxu0 %v5154_v31  ;;  %v5206_v31 = vld [vmem:[%s6970_s10 + $0x600] ss:$12 sps:$4 sm:$0xff]  }
 0x5ab   :  { %3654 = vmatpush1.bf16.msra.mxu1 %v5151_v32  ;;  %v5213_v32 = vld [vmem:[%s6970_s10 + $0x61c] ss:$12 sps:$4 sm:$0xff]  }
 0x5ac   :  { %3880 = vmatmul.mubr.bf16.vlgmr.msra.gmra.mrb[32].mxu0 %v6151_v18  ;;  %3655 = vmatprep.subr.bf16.mxu1 %v5158_v33  ;;  %v5161_v18 = vld [vmem:[%s6970_s10 + $0x528] ss:$12 sps:$4 sm:$0xff]   ;;  %v1495_v33 = vpack.c.bf16 %v1482_v28, %v1482_v28  ;;  %v5264_v28 = vld [vmem:[%s6970_s10 + $0x758] ss:$12 sps:$4 sm:$0xff]  }
 0x5ad   :  { %4669 = vmatpush3.bf16.msra.mxu0 %v5155_v35  ;;  %3919 = vmatprep.mubr.bf16.mxu0 %v6178_v34  ;;  %v5165_v34 = vld [vmem:[%s6970_s10 + $0x338] ss:$12 sps:$4 sm:$0xff]   ;;  %v5210_v35 = vld [vmem:[%s6970_s10 + $0x4d0] ss:$12 sps:$4 sm:$0xff]  }
 0x5ae   :  { %4670 = vmatprep.subr.bf16.mxu0 %v5159_v41  ;;  %v5214_v41 = vld [vmem:[%s6970_s10 + $0x5a8] ss:$12 sps:$4 sm:$0xff]  }
 0x5af   :  { %3656 = vmatpush1.bf16.msra.mxu1 %v5156_v42  ;;  %v5211_v42 = vld [vmem:[%s6970_s10 + $0x618] ss:$12 sps:$4 sm:$0xff]  }
 0x5b0   :  { %3657 = vmatprep.subr.bf16.mxu1 %v5163_v1  ;;  %v5218_v1 = vld [vmem:[%s6970_s10 + $0x634] ss:$12 sps:$4 sm:$0xff]  }
 0x5b1   :  { %4671 = vmatpush3.bf16.msra.mxu0 %v5160_v46  ;;  %v5215_v46 = vld [vmem:[%s6970_s10 + $0x4e8] ss:$12 sps:$4 sm:$0xff]  }
 0x5b2   :  { %4672 = vmatprep.subr.bf16.mxu0 %v5164_v47  ;;  %v5219_v47 = vld [vmem:[%s6970_s10 + $0x5c0] ss:$12 sps:$4 sm:$0xff]  }
 0x5b3   :  { %3658 = vmatpush1.bf16.msra.mxu1 %v5161_v18  ;;  %v5216_v18 = vld [vmem:[%s6970_s10 + $0x630] ss:$12 sps:$4 sm:$0xff]  }
 0x5b4   :  { %3659 = vmatprep.subr.bf16.mxu1 %v5168_v48  ;;  %v5223_v48 = vld [vmem:[%s6970_s10 + $0x64c] ss:$12 sps:$4 sm:$0xff]  }
 0x5b5   :  { %4673 = vmatpush3.bf16.msra.mxu0 %v5165_v34  ;;  %v5220_v34 = vld [vmem:[%s6970_s10 + $0x500] ss:$12 sps:$4 sm:$0xff]  }
 0x5b6   :  { %4674 = vmatprep.subr.bf16.mxu0 %v5169_v50  ;;  %v5224_v50 = vld [vmem:[%s6970_s10 + $0x5d8] ss:$12 sps:$4 sm:$0xff]  }
 0x5b7   :  { %3660 = vmatpush1.bf16.msra.mxu1 %v5166_v52  ;;  %v5221_v52 = vld [vmem:[%s6970_s10 + $0x648] ss:$12 sps:$4 sm:$0xff]  }
 0x5b8   :  { %3661 = vmatprep.subr.bf16.mxu1 %v5173_v54  ;;  %v5228_v54 = vld [vmem:[%s6970_s10 + $0x664] ss:$12 sps:$4 sm:$0xff]  }
 0x5b9   :  { %4675 = vmatpush3.bf16.msra.mxu0 %v5170_v56  ;;  %v5225_v56 = vld [vmem:[%s6970_s10 + $0x518] ss:$12 sps:$4 sm:$0xff]  }
 0x5ba   :  { %4676 = vmatprep.subr.bf16.mxu0 %v5174_v57  ;;  %v5229_v57 = vld [vmem:[%s6970_s10 + $0x5f0] ss:$12 sps:$4 sm:$0xff]  }
 0x5bb   :  { %3662 = vmatpush1.bf16.msra.mxu1 %v5171_v37  ;;  %v5226_v37 = vld [vmem:[%s6970_s10 + $0x660] ss:$12 sps:$4 sm:$0xff]  }
 0x5bc   :  { %3663 = vmatprep.subr.bf16.mxu1 %v5178_v58  ;;  %v935_v58 = vld [vmem:[%s6963_s3 + $0x8] sm:$0xff] }
 0x5bd   :  { %4677 = vmatpush3.bf16.msra.mxu0 %v5175_v60  ;;  %v936_v60 = vld [vmem:[#allocation3] sm:$0xff] }
 0x5be   :  { %4678 = vmatprep.subr.bf16.mxu0 %v5179_v53  ;;  %v5233_v53 = vld [vmem:[%s6970_s10 + $0x67c] ss:$12 sps:$4 sm:$0xff]  }
 0x5bf   :  { %3664 = vmatpush1.bf16.msra.mxu1 %v5176_v62  ;;  %v937_v62 = vmul.f32 %v936_v60, %v935_v58  ;;  %v5285_v58 = vld [vmem:[%s6970_s10 + $0x7b8] ss:$12 sps:$4 sm:$0xff]   ;;  %v5289_v60 = vld [vmem:[%s6970_s10 + $0x890] ss:$12 sps:$4 sm:$0xff]  }
 0x5c0   :  { %3665 = vmatprep.subr.bf16.mxu1 %v5183_v15  ;;  %v5230_v15 = vld [vmem:[%s6970_s10 + $0x530] ss:$12 sps:$4 sm:$0xff]  }
 0x5c1   :  { %4679 = vmatpush3.bf16.msra.mxu0 %v5180_v61  ;;  %v5234_v61 = vld [vmem:[%s6970_s10 + $0x6c8] ss:$12 sps:$4 sm:$0xff]  }
 0x5c2   :  { %4680 = vmatprep.subr.bf16.mxu0 %v5184_v22  ;;  %v938_v22 = vsel %vm295_vm2, %v937_v62, 0.0  ;;  %v5293_v62 = vld [vmem:[%s6970_s10 + $0x79c] ss:$12 sps:$4 sm:$0xff]  }
 0x5c3   :  { %3666 = vmatpush1.bf16.msra.mxu1 %v5181_v0  ;;  %v5231_v0 = vld [vmem:[%s6970_s10 + $0x678] ss:$12 sps:$4 sm:$0xff]   ;;  %939 = vadd.xlane.f32.xlu0 %v938_v22 }
 0x5c4   :  { %3667 = vmatprep.subr.bf16.mxu1 %v5188_v12  ;;  %v5238_v12 = vld [vmem:[%s6970_s10 + $0x694] ss:$12 sps:$4 sm:$0xff]   ;;  %v5291_v22 = vld [vmem:[%s6970_s10 + $0x798] ss:$12 sps:$4 sm:$0xff]  }
 0x5c5   :  { %4681 = vmatpush3.bf16.msra.mxu0 %v5185_v3  ;;  %v5235_v3 = vld [vmem:[%s6970_s10 + $0x608] ss:$12 sps:$4 sm:$0xff]  }
 0x5c6   :  { %4682 = vmatprep.subr.bf16.mxu0 %v5189_v5  ;;  %v5239_v5 = vld [vmem:[%s6970_s10 + $0x6e0] ss:$12 sps:$4 sm:$0xff]  }
 0x5c7   :  { %3668 = vmatpush1.bf16.msra.mxu1 %v5186_v9  ;;  %v5243_v9 = vld [vmem:[%s6970_s10 + $0x6ac] ss:$12 sps:$4 sm:$0xff]  }
 0x5c8   :  { %3669 = vmatprep.subr.bf16.mxu1 %v5193_v38  ;;  %v5240_v38 = vld [vmem:[%s6970_s10 + $0x620] ss:$12 sps:$4 sm:$0xff]  }
 0x5c9   :  { %4683 = vmatpush3.bf16.msra.mxu0 %v5190_v49  ;;  %v5244_v49 = vld [vmem:[%s6970_s10 + $0x6f8] ss:$12 sps:$4 sm:$0xff]  }
 0x5ca   :  { %4690 = vmatprep.subr.bf16.mxu0 %v5194_v16  ;;  %v5248_v16 = vld [vmem:[%s6970_s10 + $0x6c4] ss:$12 sps:$4 sm:$0xff]  }
 0x5cb   :  { %3670 = vmatpush1.bf16.msra.mxu1 %v5191_v14  ;;  %v5245_v14 = vld [vmem:[%s6970_s10 + $0x638] ss:$12 sps:$4 sm:$0xff]  }
 0x5cc   :  { %3920 = vmatmul.mubr.bf16.vlgmr.msra.gmra.mrb[36].mxu0 %v6364_v8  ;;  %3671 = vmatprep.subr.bf16.mxu1 %v5198_v10  ;;  %v5204_v8 = vld [vmem:[%s6970_s10 + $0x578] ss:$12 sps:$4 sm:$0xff]   ;;  %v5249_v10 = vld [vmem:[%s6970_s10 + $0x710] ss:$12 sps:$4 sm:$0xff]  }
 0x5cd   :  { %4691 = vmatpush3.bf16.msra.mxu0 %v5195_v44  ;;  %3959 = vmatprep.mubr.bf16.mxu0 %v6362_v7  ;;  %v5205_v7 = vld [vmem:[%s6970_s10 + $0x4b8] ss:$12 sps:$4 sm:$0xff]   ;;  %v5253_v44 = vld [vmem:[%s6970_s10 + $0x6dc] ss:$12 sps:$4 sm:$0xff]  }
 0x5ce   :  { %4692 = vmatprep.subr.bf16.mxu0 %v5199_v21  ;;  %v5254_v21 = vld [vmem:[%s6970_s10 + $0x728] ss:$12 sps:$4 sm:$0xff]  }
 0x5cf   :  { %3672 = vmatpush1.bf16.msra.mxu1 %v5196_v23  ;;  %v5251_v23 = vld [vmem:[%s6970_s10 + $0x6d8] ss:$12 sps:$4 sm:$0xff]  }
 0x5d0   :  { %3673 = vmatprep.subr.bf16.mxu1 %v5203_v24  ;;  %v5258_v24 = vld [vmem:[%s6970_s10 + $0x6f4] ss:$12 sps:$4 sm:$0xff]  }
 0x5d1   :  { %4693 = vmatpush3.bf16.msra.mxu0 %v5200_v11  ;;  %v5259_v11 = vld [vmem:[%s6970_s10 + $0x740] ss:$12 sps:$4 sm:$0xff]  }
 0x5d2   :  { %4694 = vmatprep.subr.bf16.mxu0 %v5204_v8  ;;  %v5263_v8 = vld [vmem:[%s6970_s10 + $0x70c] ss:$12 sps:$4 sm:$0xff]  }
 0x5d3   :  { %3674 = vmatpush1.bf16.msra.mxu1 %v5201_v27  ;;  %v5260_v27 = vld [vmem:[%s6970_s10 + $0x680] ss:$12 sps:$4 sm:$0xff]  }
 0x5d4   :  { %3684 = vmatprep.subr.bf16.mxu1 %v5208_v39  ;;  %v1022_v39 = vrot.slane %v6192_v40, %v6095_v43 }
 0x5d5   :  { %4695 = vmatpush3.bf16.msra.mxu0 %v5205_v7  ;;  %v1034_v7 = vrot.slane %v6192_v40, %v1001_v55 }
 0x5d6   :  { %3676 = vmatmul.mubr.bf16.vlgmr.msra.gmra.mrb[8].mxu1 %v1492_v29  ;;  %4696 = vmatprep.subr.bf16.mxu0 %v5209_v30  ;;  %v5268_v30 = vld [vmem:[%s6970_s10 + $0x724] ss:$12 sps:$4 sm:$0xff]  }
 0x5d7   :  { %3685 = vmatpush1.bf16.msra.mxu1 %v5206_v31  ;;  %3716 = vmatprep.mubr.bf16.mxu1 %v1495_v33  ;;  %v5265_v31 = vld [vmem:[%s6970_s10 + $0x698] ss:$12 sps:$4 sm:$0xff]   ;;  %v1429_v55 = vadd.f32 %v6217_v63, %v1034_v7  ;;  %v5274_v63 = vld [vmem:[%s6970_s10 + $0x848] ss:$12 sps:$4 sm:$0xff]   ;;  %v5318_v7 = vld [vmem:[%s6970_s10 + $0x920] ss:$12 sps:$4 sm:$0xff]  }
 0x5d8   :  { %3686 = vmatprep.subr.bf16.mxu1 %v5213_v32  ;;  %v1386_v32 = vadd.f32 %v6183_v36, %v1022_v39  ;;  %v5270_v36 = vld [vmem:[%s6970_s10 + $0x6b0] ss:$12 sps:$4 sm:$0xff]  }
 0x5d9   :  { %4697 = vmatpush3.bf16.msra.mxu0 %v5210_v35  ;;  %v5273_v35 = vld [vmem:[%s6970_s10 + $0x73c] ss:$12 sps:$4 sm:$0xff]  }
 0x5da   :  { %4698 = vmatprep.subr.bf16.mxu0 %v5214_v41  ;;  %v1481_v41 = vmax.f32 %v1386_v32, 0.0  ;;  %v5315_v39 = vld [vmem:[%s6970_s10 + $0x810] ss:$12 sps:$4 sm:$0xff]   ;;  %v5323_v32 = vld [vmem:[%s6970_s10 + $0x840] ss:$12 sps:$4 sm:$0xff]  }
 0x5db   :  { %3687 = vmatpush1.bf16.msra.mxu1 %v5211_v42  ;;  %v1484_v42 = vmax.f32 %v1429_v55, 0.0  ;;  %v5326_v55 = vld [vmem:[%s6970_s10 + $0x950] ss:$12 sps:$4 sm:$0xff]  }
 0x5dc   :  { %3688 = vmatprep.subr.bf16.mxu1 %v5218_v1  ;;  %v5271_v1 = vld [vmem:[%s6970_s10 + $0x738] ss:$12 sps:$4 sm:$0xff]  }
 0x5dd   :  { %4699 = vmatpush3.bf16.msra.mxu0 %v5215_v46  ;;  %v5278_v46 = vld [vmem:[%s6970_s10 + $0x754] ss:$12 sps:$4 sm:$0xff]  }
 0x5de   :  { %4700 = vmatprep.subr.bf16.mxu0 %v5219_v47  ;;  %v5275_v47 = vld [vmem:[%s6970_s10 + $0x788] ss:$12 sps:$4 sm:$0xff]  }
 0x5df   :  { %3689 = vmatpush1.bf16.msra.mxu1 %v5216_v18  ;;  %v1494_v18 = vpack.c.bf16 %v1481_v41, %v1481_v41  ;;  %v5333_v41 = vld [vmem:[%s6970_s10 + $0x888] ss:$12 sps:$4 sm:$0xff]  }
 0x5e0   :  { %3690 = vmatprep.subr.bf16.mxu1 %v5223_v48  ;;  %v5279_v48 = vld [vmem:[%s6970_s10 + $0x860] ss:$12 sps:$4 sm:$0xff]  }
 0x5e1   :  { %4701 = vmatpush3.bf16.msra.mxu0 %v5220_v34  ;;  %v1497_v34 = vpack.c.bf16 %v1484_v42, %v1484_v42  ;;  %v5338_v42 = vld [vmem:[%s6970_s10 + $0x8a4] ss:$12 sps:$4 sm:$0xff]  }
 0x5e2   :  { %4702 = vmatprep.subr.bf16.mxu0 %v5224_v50  ;;  %v5276_v50 = vld [vmem:[%s6970_s10 + $0x750] ss:$12 sps:$4 sm:$0xff]  }
 0x5e3   :  { %3691 = vmatpush1.bf16.msra.mxu1 %v5221_v52  ;;  %v5283_v52 = vld [vmem:[%s6970_s10 + $0x76c] ss:$12 sps:$4 sm:$0xff]  }
 0x5e4   :  { %3692 = vmatprep.subr.bf16.mxu1 %v5228_v54  ;;  %v5280_v54 = vld [vmem:[%s6970_s10 + $0x7a0] ss:$12 sps:$4 sm:$0xff]  }
 0x5e5   :  { %4703 = vmatpush3.bf16.msra.mxu0 %v5225_v56  ;;  %v5284_v56 = vld [vmem:[%s6970_s10 + $0x878] ss:$12 sps:$4 sm:$0xff]  }
 0x5e6   :  { %4704 = vmatprep.subr.bf16.mxu0 %v5229_v57  ;;  %v5281_v57 = vld [vmem:[%s6970_s10 + $0x768] ss:$12 sps:$4 sm:$0xff]  }
 0x5e7   :  { %3693 = vmatpush1.bf16.msra.mxu1 %v5226_v37  ;;  %v5288_v37 = vld [vmem:[%s6970_s10 + $0x784] ss:$12 sps:$4 sm:$0xff]  }
 0x5e8   :  { %3694 = vmatprep.subr.bf16.mxu1 %v5233_v53  ;;  %v5286_v53 = vld [vmem:[%s6970_s10 + $0x780] ss:$12 sps:$4 sm:$0xff]  }
 0x5e9   :  { %4705 = vmatpush3.bf16.msra.mxu0 %v5230_v15  ;;  %v5290_v15 = vld [vmem:[%s6970_s10 + $0x7d0] ss:$12 sps:$4 sm:$0xff]  }
 0x5ea   :  { %4712 = vmatprep.subr.bf16.mxu0 %v5234_v61  ;;  %v5294_v61 = vld [vmem:[%s6970_s10 + $0x8a8] ss:$12 sps:$4 sm:$0xff]  }
 0x5eb   :  { %3695 = vmatpush1.bf16.msra.mxu1 %v5231_v0  ;;  %v5298_v0 = vld [vmem:[%s6970_s10 + $0x7b4] ss:$12 sps:$4 sm:$0xff]  }
 0x5ec   :  { %3960 = vmatmul.mubr.bf16.vlgmr.msra.gmra.mrb[40].mxu0 %v1492_v29  ;;  %3696 = vmatprep.subr.bf16.mxu1 %v5238_v12  ;;  %v5261_v29 = vld [vmem:[%s6970_s10 + $0x708] ss:$12 sps:$4 sm:$0xff]  }
 0x5ed   :  { %4713 = vmatpush3.bf16.msra.mxu0 %v5235_v3  ;;  %3999 = vmatprep.mubr.bf16.mxu0 %v1495_v33  ;;  %v5266_v33 = vld [vmem:[%s6970_s10 + $0x720] ss:$12 sps:$4 sm:$0xff]   ;;  %v5295_v12 = vld [vmem:[%s6970_s10 + $0x7e8] ss:$12 sps:$4 sm:$0xff]  }
 0x5ee   :  { %4714 = vmatprep.subr.bf16.mxu0 %v5239_v5  ;;  %v5299_v3 = vld [vmem:[%s6970_s10 + $0x8c0] ss:$12 sps:$4 sm:$0xff]   ;;  %v5296_v5 = vld [vmem:[%s6970_s10 + $0x7b0] ss:$12 sps:$4 sm:$0xff]  }
 0x5ef   :  { %3697 = vmatpush1.bf16.msra.mxu1 %v5236_v6  ;;  %v5303_v6 = vld [vmem:[%s6970_s10 + $0x7cc] ss:$12 sps:$4 sm:$0xff]  }
 0x5f0   :  { %3698 = vmatprep.subr.bf16.mxu1 %v5243_v9  ;;  %v5300_v9 = vld [vmem:[%s6970_s10 + $0x800] ss:$12 sps:$4 sm:$0xff]  }
 0x5f1   :  { %4715 = vmatpush3.bf16.msra.mxu0 %v5240_v38  ;;  %v1030_v38 = vrot.slane %v6192_v40, %v6110_v51  ;;  %v5305_v40 = vld [vmem:[%s6970_s10 + $0x818] ss:$12 sps:$4 sm:$0xff]  }
 0x5f2   :  { %4716 = vmatprep.subr.bf16.mxu0 %v5244_v49  ;;  %v5304_v49 = vld [vmem:[%s6970_s10 + $0x8d8] ss:$12 sps:$4 sm:$0xff]  }
 0x5f3   :  { %3699 = vmatpush1.bf16.msra.mxu1 %v5241_v13  ;;  %v5301_v13 = vld [vmem:[%s6970_s10 + $0x7c8] ss:$12 sps:$4 sm:$0xff]  }
 0x5f4   :  { %3700 = vmatprep.subr.bf16.mxu1 %v5248_v16  ;;  %v5308_v16 = vld [vmem:[%s6970_s10 + $0x7e4] ss:$12 sps:$4 sm:$0xff]  }
 0x5f5   :  { %4717 = vmatpush3.bf16.msra.mxu0 %v5245_v14 }
 0x5f6   :  { %4718 = vmatprep.subr.bf16.mxu0 %v5249_v10  ;;  %v1427_v10 = vadd.f32 %v6212_v59, %v1030_v38  ;;  %v5310_v59 = vld [vmem:[%s6970_s10 + $0x830] ss:$12 sps:$4 sm:$0xff]  }
 0x5f7   :  { %3701 = vmatpush1.bf16.msra.mxu1 %v5246_v19 }
 0x5f8   :  { %3702 = vmatprep.subr.bf16.mxu1 %v5253_v44  ;;  %v5309_v44 = vld [vmem:[%s6970_s10 + $0x8f0] ss:$12 sps:$4 sm:$0xff]  }
 0x5f9   :  { %4719 = vmatpush3.bf16.msra.mxu0 %v5250_v20 }
 0x5fa   :  { %4720 = vmatprep.subr.bf16.mxu0 %v5254_v21  ;;  %v5306_v21 = vld [vmem:[%s6970_s10 + $0x7e0] ss:$12 sps:$4 sm:$0xff]  }
 0x5fb   :  { %3703 = vmatpush1.bf16.msra.mxu1 %v5251_v23 }
 0x5fc   :  { %3704 = vmatprep.subr.bf16.mxu1 %v5258_v24  ;;  %v5313_v24 = vld [vmem:[%s6970_s10 + $0x7fc] ss:$12 sps:$4 sm:$0xff]  }
 0x5fd   :  { %4721 = vmatpush3.bf16.msra.mxu0 %v5255_v25  ;;  %v1483_v25 = vmax.f32 %v1427_v10, 0.0 }
 0x5fe   :  { %4722 = vmatprep.subr.bf16.mxu0 %v5259_v11  ;;  %v5311_v11 = vld [vmem:[%s6970_s10 + $0x7f8] ss:$12 sps:$4 sm:$0xff]  }
 0x5ff   :  { %3705 = vmatpush1.bf16.msra.mxu1 %v5256_v26  ;;  %v5317_v26 = vld [vmem:[%s6970_s10 + $0x814] ss:$12 sps:$4 sm:$0xff]  }
 0x600   :  { %3706 = vmatprep.subr.bf16.mxu1 %v5263_v8  ;;  %v5314_v8 = vld [vmem:[%s6970_s10 + $0x908] ss:$12 sps:$4 sm:$0xff]  }
 0x601   :  { %4723 = vmatpush3.bf16.msra.mxu0 %v5260_v27  ;;  %v1496_v27 = vpack.c.bf16 %v1483_v25, %v1483_v25 }
 0x602   :  { %4724 = vmatprep.subr.bf16.mxu0 %v5264_v28  ;;  %v5321_v28 = vld [vmem:[%s6970_s10 + $0x82c] ss:$12 sps:$4 sm:$0xff]  }
 0x603   :  { %3707 = vmatpush1.bf16.msra.mxu1 %v5261_v29  ;;  %v5319_v29 = vld [vmem:[%s6970_s10 + $0x828] ss:$12 sps:$4 sm:$0xff]  }
 0x604   :  { %3708 = vmatprep.subr.bf16.mxu1 %v5268_v30  ;;  %v5325_v30 = vld [vmem:[%s6970_s10 + $0x844] ss:$12 sps:$4 sm:$0xff]  }
 0x605   :  { %4725 = vmatpush3.bf16.msra.mxu0 %v5265_v31  ;;  %v5322_v31 = vld [vmem:[%s6970_s10 + $0x938] ss:$12 sps:$4 sm:$0xff]  }
 0x606   :  { %4726 = vmatprep.subr.bf16.mxu0 %v5269_v17  ;;  %v5329_v17 = vld [vmem:[%s6970_s10 + $0x85c] ss:$12 sps:$4 sm:$0xff]  }
 0x607   :  { %3709 = vmatpush1.bf16.msra.mxu1 %v5266_v33  ;;  %v5327_v33 = vld [vmem:[%s6970_s10 + $0x858] ss:$12 sps:$4 sm:$0xff]  }
 0x608   :  { %3710 = vmatprep.subr.bf16.mxu1 %v5273_v35  ;;  %v5332_v35 = vld [vmem:[%s6970_s10 + $0x874] ss:$12 sps:$4 sm:$0xff]  }
 0x609   :  { %4727 = vmatpush3.bf16.msra.mxu0 %v5270_v36  ;;  %v5330_v36 = vld [vmem:[%s6970_s10 + $0x870] ss:$12 sps:$4 sm:$0xff]  }
 0x60a   :  { %4734 = vmatprep.subr.bf16.mxu0 %v5274_v63 }
 0x60b   :  { %3711 = vmatpush1.bf16.msra.mxu1 %v5271_v1 }
 0x60c   :  { %4000 = vmatmul.mubr.bf16.vlgmr.msra.gmra.mrb[44].mxu0 %v1494_v18  ;;  %3712 = vmatprep.subr.bf16.mxu1 %v5278_v46 }
 0x60d   :  { %4735 = vmatpush3.bf16.msra.mxu0 %v5275_v47  ;;  %4039 = vmatprep.mubr.bf16.mxu0 %v1497_v34  ;;  %v5336_v47 = vld [vmem:[%s6970_s10 + $0x8a0] ss:$12 sps:$4 sm:$0xff]  }
 0x60e   :  { %4736 = vmatprep.subr.bf16.mxu0 %v5279_v48  ;;  %v5339_v48 = vld [vmem:[%s6970_s10 + $0x8b8] ss:$12 sps:$4 sm:$0xff]  }
 0x60f   :  { %3713 = vmatpush1.bf16.msra.mxu1 %v5276_v50  ;;  %v5342_v50 = vld [vmem:[%s6970_s10 + $0x8d0] ss:$12 sps:$4 sm:$0xff]  }
 0x610   :  { %3714 = vmatprep.subr.bf16.mxu1 %v5283_v52  ;;  %v5347_v52 = vld [vmem:[%s6970_s10 + $0x8ec] ss:$12 sps:$4 sm:$0xff]  }
 0x611   :  { %4737 = vmatpush3.bf16.msra.mxu0 %v5280_v54  ;;  %v5345_v54 = vld [vmem:[%s6970_s10 + $0x8e8] ss:$12 sps:$4 sm:$0xff]  }
 0x612   :  { %4738 = vmatprep.subr.bf16.mxu0 %v5284_v56 }
 0x613   :  { %3715 = vmatpush1.bf16.msra.mxu1 %v5281_v57 }
 0x614   :  { %3725 = vmatprep.subr.bf16.mxu1 %v5288_v37 }
 0x615   :  { %4739 = vmatpush3.bf16.msra.mxu0 %v5285_v58 }
 0x616   :  { %3717 = vmatmul.mubr.bf16.vlgmr.msra.gmra.mrb[8].mxu1 %v1494_v18  ;;  %4740 = vmatprep.subr.bf16.mxu0 %v5289_v60  ;;  %v5341_v18 = vld [vmem:[%s6970_s10 + $0x8bc] ss:$12 sps:$4 sm:$0xff]  }
 0x617   :  { %3726 = vmatpush1.bf16.msra.mxu1 %v5286_v53  ;;  %3757 = vmatprep.mubr.bf16.mxu1 %v1497_v34  ;;  %v5344_v34 = vld [vmem:[%s6970_s10 + $0x8d4] ss:$12 sps:$4 sm:$0xff]  }
 0x618   :  { %3727 = vmatprep.subr.bf16.mxu1 %v5293_v62  ;;  %v6924_v53 = vld [vmem:[%s6971_s11] sm:$0x7] }
 0x619   :  { %4741 = vmatpush3.bf16.msra.mxu0 %v5290_v15  ;;  %v1912_v62 = vrot.slane %v6924_v53, %v6110_v51 }
 0x61a   :  { %4742 = vmatprep.subr.bf16.mxu0 %v5294_v61 }
 0x61b   :  { %3728 = vmatpush1.bf16.msra.mxu1 %v5291_v22 }
 0x61c   :  { %3729 = vmatprep.subr.bf16.mxu1 %v5298_v0 }
 0x61d   :  { %4743 = vmatpush3.bf16.msra.mxu0 %v5295_v12 }
 0x61e   :  { %4744 = vmatprep.subr.bf16.mxu0 %v5299_v3 }
 0x61f   :  { %3730 = vmatpush1.bf16.msra.mxu1 %v5296_v5 }
 0x620   :  { %3731 = vmatprep.subr.bf16.mxu1 %v5303_v6 }
 0x621   :  { %4745 = vmatpush3.bf16.msra.mxu0 %v5300_v9  ;;  %v6814_v14 = vpop.f32.mrb[20].mxu0 }
 0x622   :  { %v6820_v19 = vpop.f32.mrb[21].mxu0  ;;  %4746 = vmatprep.subr.bf16.mxu0 %v5304_v49 }
 0x623   :  { %3732 = vmatpush1.bf16.msra.mxu1 %v5301_v13  ;;  %v3558_v20 = vpop.f32.mrb[22].mxu0 }
 0x624   :  { %v3559_v23 = vpop.f32.mrb[23].mxu0  ;;  %3733 = vmatprep.subr.bf16.mxu1 %v5308_v16 }
 0x625   :  { %4747 = vmatpush3.bf16.msra.mxu0 %v5305_v40 }
 0x626   :  { %4748 = vmatprep.subr.bf16.mxu0 %v5309_v44 }
 0x627   :  { %3734 = vmatpush1.bf16.msra.mxu1 %v5306_v21 }
 0x628   :  { %3735 = vmatprep.subr.bf16.mxu1 %v5313_v24 }
 0x629   :  { %4749 = vmatpush3.bf16.msra.mxu0 %v5310_v59 }
 0x62a   :  { %4795 = vmatprep.subr.bf16.mxu0 %v5416_v2 }
 0x62b   :  { %3736 = vmatpush1.bf16.msra.mxu1 %v5311_v11 }
 0x62c   :  { %4040 = vmatmul.mubr.bf16.vlgmr.msra.gmra.mrb[48].mxu0 %v1496_v27  ;;  %3737 = vmatprep.subr.bf16.mxu1 %v5317_v26 }
 0x62d   :  { %4796 = vmatpush3.bf16.msra.mxu0 %v5314_v8  ;;  %4803 = vmatprep.mubr.msk.bf16.mxu0 %vm5417_vm0, %v5416_v2 }
 0x62e   :  { %4797 = vmatprep.subr.bf16.mxu0 %v5416_v2 }
 0x62f   :  { %3738 = vmatpush1.bf16.msra.mxu1 %v5315_v39 }
 0x630   :  { %3739 = vmatprep.subr.bf16.mxu1 %v5321_v28 }
 0x631   :  { %4798 = vmatpush3.bf16.msra.mxu0 %v5318_v7 }
 0x632   :  { %4799 = vmatprep.subr.bf16.mxu0 %v5416_v2 }
 0x633   :  { %3740 = vmatpush1.bf16.msra.mxu1 %v5319_v29 }
 0x634   :  { %3741 = vmatprep.subr.bf16.mxu1 %v5325_v30 }
 0x635   :  { %4800 = vmatpush3.bf16.msra.mxu0 %v5322_v31 }
 0x636   :  { %4801 = vmatprep.subr.bf16.mxu0 %v5416_v2  ;;  %v5335_v2 = vld [vmem:[%s6970_s10 + $0x88c] ss:$12 sps:$4 sm:$0xff]  }
 0x637   :  { %3742 = vmatpush1.bf16.msra.mxu1 %v5323_v32 }
 0x638   :  { %3743 = vmatprep.subr.bf16.mxu1 %v5329_v17 }
 0x639   :  { %4802 = vmatpush3.bf16.msra.mxu0 %v5326_v55 }
 0x63b   :  { %3744 = vmatpush1.bf16.msra.mxu1 %v5327_v33 }
 0x63c   :  { %4804 = vmatmul.mubr.msk.bf16.vlgmr.msra.gmra.mrb[52].mxu0 %vm353_vm10, %v6222_v4  ;;  %3745 = vmatprep.subr.bf16.mxu1 %v5332_v35 }
 0x63f   :  { %3746 = vmatpush1.bf16.msra.mxu1 %v5330_v36  ;;  %v6893_v63 = vpop.f32.mrb[24].mxu0 }
 0x640   :  { %3747 = vmatprep.subr.bf16.mxu1 %v5335_v2  ;;  %v6898_v1 = vpop.f32.mrb[25].mxu0 }
 0x641   :  { %v3804_v4 = vpop.f32.mrb[26].mxu0 }
 0x642   :  { %v3805_v46 = vpop.f32.mrb[27].mxu0 }
 0x643   :  { %3748 = vmatpush1.bf16.msra.mxu1 %v5333_v41 }
 0x644   :  { %3749 = vmatprep.subr.bf16.mxu1 %v5338_v42 }
 0x647   :  { %3750 = vmatpush1.bf16.msra.mxu1 %v5336_v47 }
 0x648   :  { %3751 = vmatprep.subr.bf16.mxu1 %v5341_v18 }
 0x64b   :  { %3752 = vmatpush1.bf16.msra.mxu1 %v5339_v48 }
 0x64c   :  { %3753 = vmatprep.subr.bf16.mxu1 %v5344_v34 }
 0x64f   :  { %3754 = vmatpush1.bf16.msra.mxu1 %v5342_v50 }
 0x650   :  { %3755 = vmatprep.subr.bf16.mxu1 %v5347_v52  ;;  %v940_v3 = vpop.xlane.xlu0 %939 }
 0x651   :  { %v941_v6 = vrot.slane %v940_v3, 4 }
 0x653   :  { %3756 = vmatpush1.bf16.msra.mxu1 %v5345_v54  ;;  %v942_v38 = vadd.f32 %v941_v6, %v940_v3 }
 0x655   :  { %v943_v49 = vrot.slane %v942_v38, 2 }
 0x656   :  { %3758 = vmatmul.mubr.bf16.vlgmr.msra.gmra.mrb[8].mxu1 %v1496_v27 }
 0x657   :  { %v944_v13 = vadd.f32 %v943_v49, %v942_v38 }
 0x659   :  { %v945_v16 = vrot.slane %v944_v13, 1 }
 0x65b   :  { %v946_v40 = vadd.f32 %v945_v16, %v944_v13 }
 0x65d   :  { %4829 = vpush %v946_v40 }
 0x65f   :  { %v4640_v56 = vpop.f32.mrb[28].mxu0 }
 0x660   :  { %v4641_v57 = vpop.f32.mrb[29].mxu0 }
 0x661   :  { %v4642_v37 = vadd.f32 %v4641_v57, %v4640_v56  ;;  %v4643_v58 = vpop.f32.mrb[30].mxu0 }
 0x662   :  { %v4644_v60 = vpop.f32.mrb[31].mxu0 }
 0x663   :  { %v3842_v22 = vadd.f32 %v4642_v37, %v1912_v62 }
 0x67f   :  { %v4662_v15 = vpop.f32.mrb[32].mxu0 }
 0x680   :  { %v4663_v61 = vpop.f32.mrb[33].mxu0 }
 0x681   :  { %v4664_v0 = vadd.f32 %v4663_v61, %v4662_v15  ;;  %v4665_v12 = vpop.f32.mrb[34].mxu0 }
 0x682   :  { %v4666_v5 = vpop.f32.mrb[35].mxu0 }
 0x683   :  { %v3882_v9 = vadd.f32 %v4664_v0, %v3842_v22 }
 0x68e   :  { %s4830_s10 = spop %4829 }
 0x68f   :  { %s948_s11 = smul.f32 0.00390625, %s4830_s10 }
 0x691   :  { %v949_v8 = vstv %s948_s11 }
 0x692   :  { %952 = vst.msk [vmem:[#allocation6] sm:$0x1] %vm951_vm12, %v949_v8 }
 0x69f   :  { %v4684_v10 = vpop.f32.mrb[36].mxu0 }
 0x6a0   :  { %v4685_v44 = vpop.f32.mrb[37].mxu0 }
 0x6a1   :  { %v4686_v20 = vadd.f32 %v4685_v44, %v4684_v10  ;;  %v4687_v21 = vpop.f32.mrb[38].mxu0 }
 0x6a2   :  { %v4688_v51 = vpop.f32.mrb[39].mxu0 }
 0x6a3   :  { %v3922_v23 = vadd.f32 %v4686_v20, %v3882_v9 }
 0x6bf   :  { %v4706_v24 = vpop.f32.mrb[40].mxu0 }
 0x6c0   :  { %v4707_v59 = vpop.f32.mrb[41].mxu0 }
 0x6c1   :  { %v4708_v25 = vadd.f32 %v4707_v59, %v4706_v24  ;;  %v4709_v11 = vpop.f32.mrb[42].mxu0 }
 0x6c2   :  { %v4710_v26 = vpop.f32.mrb[43].mxu0 }
 0x6c3   :  { %v3962_v27 = vadd.f32 %v4708_v25, %v3922_v23 }
 0x6c4   :  { %5371 = shalt.err (!%p5368_p5)
}
 0x6c5   :  { %s5372_s16 = scalar_lea.hbm %s6973_s13, 16 }
 0x6c6   :  { %p5373_p6 = scmp.ne.s32.totalorder %s6973_s13, %s5372_s16  ;;  %p5376_p7 = scmp.lt.u32.totalorder %s5372_s16, %s6973_s13 }
 0x6c8   :  { %p5378_p8 = pnand %p5376_p7, %p5373_p6 }
 0x6ca   :  { %5381 = shalt.err (!%p5378_p8)
}
 0x6cb   :  { %4128 = dma.vmem_to_hbm [thread:$0]  %s4126_s28, 16, %s6973_s13, [#allocation7]   ;;  %v1904_v34 = vrot.slane %v6924_v53, %v6095_v43  ;;  %v1908_v50 = vrot.slane %v6924_v53, %v6103_v45  ;;  %vm4107_vm13 = vcmask 359424  }
 0x6cc   :  { %s5425_s13 = smov [#allocation4]  }
 0x6cd   :  { %v3555_v52 = vadd.f32 %v6814_v14, %v1904_v34  ;;  %v3557_v54 = vadd.f32 %v6820_v19, %v1908_v50  ;;  %s4115_s23 = sshll.u32 %s5425_s13, 4  ;;  %s4116_s23 = int_to_ptr.vmem [resolvable:$true] %s4115_s23 }
 0x6ce   :  { %s5382_s17 = scalar_lea.vmem %s4116_s23, 384  ;;  %p5387_p10 = scmp.lt.s32.totalorder %s4116_s23, %s4116_s23 }
 0x6cf   :  { %p5383_p9 = scmp.ne.s32.totalorder %s4116_s23, %s5382_s17  ;;  %p5388_p11 = scmp.lt.s32.totalorder %s5382_s17, %s5382_s17 }
 0x6d1   :  { %p5389_p12 = por %p5388_p11, %p5387_p10 }
 0x6d3   :  { %p5390_p13 = pnand %p5389_p12, %p5383_p9 }
 0x6df   :  { %v4728_v39 = vpop.f32.mrb[44].mxu0 }
 0x6e0   :  { %v4729_v28 = vpop.f32.mrb[45].mxu0 }
 0x6e1   :  { %v4730_v7 = vadd.f32 %v4729_v28, %v4728_v39  ;;  %v4731_v29 = vpop.f32.mrb[46].mxu0 }
 0x6e2   :  { %v4732_v30 = vpop.f32.mrb[47].mxu0 }
 0x6e3   :  { %v4002_v31 = vadd.f32 %v4730_v7, %v3962_v27 }
 0x6ff   :  { %v4750_v32 = vpop.f32.mrb[48].mxu0 }
 0x700   :  { %v4751_v17 = vpop.f32.mrb[49].mxu0 }
 0x701   :  { %v4752_v55 = vadd.f32 %v4751_v17, %v4750_v32  ;;  %v4753_v33 = vpop.f32.mrb[50].mxu0 }
 0x702   :  { %v4754_v35 = vpop.f32.mrb[51].mxu0 }
 0x703   :  { %v4042_v36 = vadd.f32 %v4752_v55, %v4002_v31 }
 0x70f   :  { %v4081_v2 = vpop.f32.mrb[52].mxu0 }
 0x710   :  { %v4082_v41 = vadd.f32 %v4081_v2, %v4042_v36  ;;  %v4805_v42 = vpop.f32.mrb[53].mxu0 }
 0x711   :  { %v4084_v4 = vpop.f32.mrb[54].mxu0 }
 0x712   :  { %v4544_v46 = vmul.f32 -1.442695, %v4082_v41  ;;  %v4806_v47 = vpop.f32.mrb[55].mxu0 }
 0x714   :  { %5348 = vpow2.f32 %v4544_v46 }
 0x71e   :  { %v5349_v18 = vpop.eup %5348 }
 0x71f   :  { %v4098_v48 = vadd.f32 1.0, %v5349_v18 }
 0x721   :  { %5350 = vrcp.f32 %v4098_v48 }
 0x729   :  { %v3759_v56 = vpop.f32.mrb[8].mxu1 }
 0x72a   :  { %v4808_v57 = vadd.f32 %v3759_v56, %v3555_v52  ;;  %v3761_v37 = vpop.f32.mrb[9].mxu1 }
 0x72b   :  { %v5351_v58 = vpop.eup %5350  ;;  %v4811_v60 = vadd.f32 %v3761_v37, %v3557_v54  ;;  %v3763_v62 = vpop.f32.mrb[10].mxu1 }
 0x72c   :  { %v4809_v15 = vadd.f32 %v4808_v57, %v6893_v63  ;;  %v3764_v61 = vpop.f32.mrb[11].mxu1  ;;  %4108 = vst.msk [vmem:[#allocation4 + $0x10] sm:$0xff] %vm4107_vm13, %v5351_v58 }
 0x72d   :  { %v4812_v43 = vadd.f32 %v4811_v60, %v6898_v1 }
 0x72e   :  { %v4542_v22 = vmul.f32 -1.442695, %v4809_v15 }
 0x72f   :  { %v4543_v0 = vmul.f32 -1.442695, %v4812_v43 }
 0x730   :  { %5352 = vpow2.f32 %v4542_v22 }
 0x731   :  { %5354 = vpow2.f32 %v4543_v0 }
 0x73a   :  { %v5353_v45 = vpop.eup %5352 }
 0x73b   :  { %v5355_v14 = vpop.eup %5354  ;;  %v4096_v19 = vadd.f32 1.0, %v5353_v45 }
 0x73c   :  { %v4097_v53 = vadd.f32 1.0, %v5355_v14 }
 0x73d   :  { %5356 = vrcp.f32 %v4096_v19 }
 0x73e   :  { %5358 = vrcp.f32 %v4097_v53 }
 0x747   :  { %v5357_v12 = vpop.eup %5356 }
 0x748   :  { %v5359_v3 = vpop.eup %5358  ;;  %4105 = vst [vmem:[#allocation4] sm:$0xff] %v5357_v12 }
 0x749   :  { %4106 = vst [vmem:[#allocation4 + $0x8] sm:$0xff] %v5359_v3 }
 0x74a   :  { %5393 = shalt.err (!%p5390_p13)
}
 0x74b   :  { %s5394_s20 = scalar_lea.hbm %s6972_s12, 384 }
 0x74c   :  { %p5395_p0 = scmp.ne.s32.totalorder %s6972_s12, %s5394_s20  ;;  %p5398_p1 = scmp.lt.u32.totalorder %s5394_s20, %s6972_s12 }
 0x74e   :  { %p5400_p2 = pnand %p5398_p1, %p5395_p0 }
 0x750   :  { %5403 = shalt.err (!%p5400_p2)
}
 0x751   :  { %4118 = dma.vmem_to_hbm [thread:$0]  %s4116_s23, 384, %s6972_s12, [#allocation5]  }
 0x752   :  { %5408 = dma.done.wait [#allocation5], 384  }
 0x753   :  { %5409 = vsyncadd [#allocation5], 4294966912 }
 0x754   :  { %5410 = dma.done.wait [#allocation7], 16  }
 0x755   :  { %5411 = vsyncadd [#allocation7], 4294967280 }
 0x756   :  { %4135 = vsyncpa [#allocation5], 1 }
 0x757   :  { %4136 = vsyncpa [#allocation7], 1 }

</bundles_post_ra>
